<compile_context>
chip_gen: v5e
topology: v5e:2x2
jax: 0.10.0
libtpu: 0.0.40
codegen_flags: <defaults>
</compile_context>

<pallas_src>
import numpy as np
import jax
import jax.numpy as jnp
from jax import lax
from jax.experimental import pallas as pl
from jax.experimental.pallas import tpu as pltpu

KH = KW = 3  # fixed 3x3 kernel


def _up_conv_kernel(x_ref, wv_ref, b_ref, o_ref, xpad_ref):
    """One (image, row-tile) step of fused Upsample+Conv3x3+BN+ReLU.

    x_ref   : VMEM (C_in, H, W)       original image (resident across its row tiles)
    wv_ref  : VMEM (C_in*9, NGW)      per-(ci,dy,dx) lane-grouped, BN-folded phase weights
    b_ref   : VMEM (1, NGW)           BN-folded bias, constant within each lane group
    o_ref   : VMEM (HI, NGW)          phase-plane output rows of this tile
    xpad_ref: VMEM (C_in, H+2, W+2)   scratch: x with 1-px zero halo (built at t == 0)
    """
    c_in, h, w = x_ref.shape
    hi, ngw = o_ref.shape
    ng = ngw // w                      # number of (co, a, b) lane groups
    t = pl.program_id(1)

    # Build the zero-halo copy of this image once (first row tile); it stays resident
    # in scratch for the remaining row tiles of the same image.
    @pl.when(t == 0)
    def _build_halo():
        xpad_ref[...] = jnp.zeros(xpad_ref.shape, xpad_ref.dtype)
        xpad_ref[:, 1:h + 1, 1:w + 1] = x_ref[...]

    p0 = pl.multiple_of(t * hi, hi)    # first source row of this tile (sublane-aligned)

    # Accumulator starts at the folded bias (review item: no epilogue bias add).
    acc = jnp.broadcast_to(b_ref[...], (hi, ngw)).astype(jnp.float32)

    for ci in range(c_in):
        ext = xpad_ref[ci, pl.ds(p0, hi + 2), :]                  # (hi+2, w+2) haloed rows
        for dx in range(KW):
            # One lane-dense slab per horizontal tap: the (hi+2, w) window replicated
            # across all lane groups -> full 128-lane vregs for every FMA below.
            slab = jnp.concatenate([ext[:, dx:dx + w]] * ng, axis=1)   # (hi+2, ngw)
            for dy in range(KH):
                wvec = wv_ref[(ci * KH + dy) * KW + dx:(ci * KH + dy) * KW + dx + 1, :]
                acc = acc + wvec * slab[dy:dy + hi, :]            # per-group VPU FMA
    o_ref[...] = jnp.maximum(acc, 0.0).astype(o_ref.dtype)        # ReLU, dense (8,128) store


def up_conv_pallas(x, conv_w, conv_b, bn_gamma, bn_beta, bn_mean, bn_var, *, eps=1e-5):
    """x: (N, C_in, H, W) f32 -> (N, C_out, 2H, 2W) f32 (Upsample+Conv3x3+BN+ReLU)."""
    n, c_in, h, w = x.shape
    c_out = conv_w.shape[0]
    h_up, w_up = 2 * h, 2 * w

    # --- Fold eval-mode BatchNorm into the conv parameters. ---
    # TODO(synk): training-mode BatchNorm (batch statistics, a cross-image reduction) is
    # not implemented in-kernel; eval-mode running statistics are used.
    scale = bn_gamma / jnp.sqrt(bn_var + eps)                         # (C_out,)
    w_eff = (conv_w * scale[:, None, None, None]).astype(jnp.float32)  # (C_out,C_in,3,3)
    b_eff = ((conv_b - bn_mean) * scale + bn_beta).astype(jnp.float32)  # (C_out,)

    # --- Fold the 2x nearest upsample into per-phase weights (pixel-shuffle form). ---
    # Output pixel (2p+a, 2q+b) only sees source pixels (p+dy, q+dx), dy,dx in {-1,0,1}.
    # A[a, dy+1, ky] marks which 3x3 rows ky collapse onto source offset dy for phase a.
    A_np = np.zeros((2, KH, KH), np.float32)
    for a in range(2):
        for k in range(KH):
            A_np[a, (a + k - 1) // 2 + 1, k] = 1.0
    A = jnp.asarray(A_np)
    # wfold[co, ci, a, b, dy, dx] = sum_{ky,kx} A[a,dy,ky] * A[b,dx,kx] * w_eff[co,ci,ky,kx]
    wfold = jnp.einsum('ady,bex,oiyx->oiabde', A, A, w_eff)

    # Kernel lane layout: lane = ((co*2 + a)*2 + b)*W + q ; NGW = C_out*4*W (=128 here).
    ngw = c_out * 4 * w
    wv = jnp.transpose(wfold, (1, 4, 5, 0, 2, 3))                     # (ci,dy,dx,co,a,b)
    wv = jnp.broadcast_to(wv[..., None], (c_in, KH, KW, c_out, 2, 2, w))
    wv = wv.reshape(c_in * KH * KW, ngw)                              # (36, NGW)
    bias_vec = jnp.broadcast_to(b_eff[:, None], (c_out, 4 * w)).reshape(1, ngw)

    # --- Grid: images x row tiles (HI source rows => 2*HI output rows per step). ---
    hi = 8 if h % 8 == 0 else h            # keep the (8,128) block rule; full-dim fallback
    n_tiles = h // hi

    out_ph = pl.pallas_call(
        _up_conv_kernel,
        out_shape=jax.ShapeDtypeStruct((n, h, ngw), x.dtype),
        grid_spec=pltpu.PrefetchScalarGridSpec(
            num_scalar_prefetch=0,
            grid=(n, n_tiles),
            in_specs=[
                # Whole original image, resident across its row tiles (one DMA per image).
                pl.BlockSpec((pl.Squeezed(), c_in, h, w), lambda i, t: (i, 0, 0, 0)),
                # Small parameter tables stay resident in VMEM.
                pl.BlockSpec((c_in * KH * KW, ngw), lambda i, t: (0, 0)),
                pl.BlockSpec((1, ngw), lambda i, t: (0, 0)),
            ],
            out_specs=pl.BlockSpec((pl.Squeezed(), hi, ngw), lambda i, t: (i, t, 0)),
            scratch_shapes=[pltpu.VMEM((c_in, h + 2, w + 2), jnp.float32)],
        ),
        compiler_params=pltpu.CompilerParams(
            dimension_semantics=("parallel", "arbitrary")),
    )(x.astype(jnp.float32), wv, bias_vec)

    # Re-interleave the phase planes into NCHW (one tiny output-sized XLA transpose;
    # in a real model this would fuse with / be absorbed by the consumer).
    y = out_ph.reshape(n, h, c_out, 2, 2, w)        # [n, p, co, a, b, q]
    y = jnp.transpose(y, (0, 2, 1, 3, 5, 4))         # [n, co, p, a, q, b]
    return y.reshape(n, c_out, h_up, w_up)


if __name__ == "__main__":
    # Small shapes consistent with the module: batch=2, ch_in=4, ch_out=2, spatial=16.
    N, C_in, H, W = 2, 4, 16, 16
    C_out = 2
    eps = 1e-5

    key = jax.random.PRNGKey(0)
    kx, kw_, kb = jax.random.split(key, 3)

    x = jax.random.normal(kx, (N, C_in, H, W), dtype=jnp.float32)
    # Conv2d-like deterministic init.
    fan_in = C_in * KH * KW
    bound = 1.0 / (fan_in ** 0.5)
    conv_w = jax.random.uniform(kw_, (C_out, C_in, KH, KW), jnp.float32, -bound, bound)
    conv_b = jax.random.uniform(kb, (C_out,), jnp.float32, -bound, bound)
    # Fresh BatchNorm2d parameters / running statistics (PyTorch defaults).
    bn_gamma = jnp.ones((C_out,), jnp.float32)
    bn_beta = jnp.zeros((C_out,), jnp.float32)
    bn_mean = jnp.zeros((C_out,), jnp.float32)
    bn_var = jnp.ones((C_out,), jnp.float32)

    y = up_conv_pallas(x, conv_w, conv_b, bn_gamma, bn_beta, bn_mean, bn_var, eps=eps)
    y = jax.block_until_ready(y)

    # Pure-JAX reference: Upsample(nearest, x2) -> Conv2d(3x3, pad=1, bias) -> BN(eval) -> ReLU.
    x_up = jnp.repeat(jnp.repeat(x, 2, axis=2), 2, axis=3)
    y_conv = lax.conv_general_dilated(
        x_up, conv_w, window_strides=(1, 1), padding=((1, 1), (1, 1)),
        dimension_numbers=("NCHW", "OIHW", "NCHW")) + conv_b[None, :, None, None]
    y_bn = (y_conv - bn_mean[None, :, None, None]) / jnp.sqrt(
        bn_var[None, :, None, None] + eps) * bn_gamma[None, :, None, None] \
        + bn_beta[None, :, None, None]
    y_ref = jnp.maximum(y_bn, 0.0)

    assert y.shape == (N, C_out, 2 * H, 2 * W)
    assert jnp.allclose(y, y_ref, atol=1e-4, rtol=1e-4), "mismatch vs reference"

    print("KERNEL_OK")
</pallas_src>

<mosaic_0001>
module attributes {stable_mosaic.version = 11 : i64} {
  func.func @_up_conv_kernel(%arg0: i32, %arg1: i32, %arg2: memref<1x4x16x16xf32, #tpu.memory_space<vmem>>, %arg3: memref<36x128xf32, #tpu.memory_space<vmem>>, %arg4: memref<1x128xf32, #tpu.memory_space<vmem>>, %arg5: memref<1x8x128xf32, #tpu.memory_space<vmem>>, %arg6: memref<4x18x18xf32, #tpu.memory_space<vmem>>) attributes {dimension_semantics = [#tpu.dimension_semantics<parallel>, #tpu.dimension_semantics<arbitrary>], iteration_bounds = array<i64: 2, 2>, scalar_prefetch = 0 : i64, scratch_operands = 1 : i64, tpu.core_type = #tpu.core_type<tc>, window_params = [{transform_indices = @transform_0, window_bounds = array<i64: 1, 4, 16, 16>}, {pipeline_mode = #tpu.pipeline_mode<synchronous>, transform_indices = @transform_1, window_bounds = array<i64: 36, 128>}, {pipeline_mode = #tpu.pipeline_mode<synchronous>, transform_indices = @transform_2, window_bounds = array<i64: 1, 128>}, {transform_indices = @transform_3, window_bounds = array<i64: 1, 8, 128>}]} {
    %c0_i32 = arith.constant 0 : i32
    %0 = arith.cmpi eq, %arg1, %c0_i32 : i32
    %1 = arith.extui %0 : i1 to i32
    %c0_i32_0 = arith.constant 0 : i32
    %2 = arith.cmpi ne, %1, %c0_i32_0 : i32
    scf.if %2 {
      %cst_50 = arith.constant 0.000000e+00 : f32
      %229 = vector.broadcast %cst_50 : f32 to vector<4x18x18xf32>
      %c0_51 = arith.constant 0 : index
      %c0_52 = arith.constant 0 : index
      %c0_53 = arith.constant 0 : index
      %230 = vector.load %arg6[%c0_51, %c0_52, %c0_53] : memref<4x18x18xf32, #tpu.memory_space<vmem>>, vector<4x18x18xf32>
      tpu.vector_store %arg6[%c0_51, %c0_52, %c0_53], %229 {strides = array<i32>} : memref<4x18x18xf32, #tpu.memory_space<vmem>>, vector<4x18x18xf32>,
      %c0_54 = arith.constant 0 : index
      %c0_55 = arith.constant 0 : index
      %c0_56 = arith.constant 0 : index
      %c0_57 = arith.constant 0 : index
      %231 = vector.load %arg2[%c0_54, %c0_55, %c0_56, %c0_57] : memref<1x4x16x16xf32, #tpu.memory_space<vmem>>, vector<1x4x16x16xf32>
      %232 = vector.shape_cast %231 : vector<1x4x16x16xf32> to vector<4x16x16xf32>
      %c0_58 = arith.constant 0 : index
      %c1_59 = arith.constant 1 : index
      %c1_60 = arith.constant 1 : index
      %233 = vector.load %arg6[%c0_58, %c1_59, %c1_60] : memref<4x18x18xf32, #tpu.memory_space<vmem>>, vector<4x16x16xf32>
      tpu.vector_store %arg6[%c0_58, %c1_59, %c1_60], %232 {strides = array<i32>} : memref<4x18x18xf32, #tpu.memory_space<vmem>>, vector<4x16x16xf32>,
    } else {
    }
    %c8_i32 = arith.constant 8 : i32
    %3 = arith.muli %arg1, %c8_i32 : i32
    %4 = tpu.assume_multiple %3, 8 : i32
    %c0 = arith.constant 0 : index
    %c0_1 = arith.constant 0 : index
    %5 = vector.load %arg4[%c0, %c0_1] : memref<1x128xf32, #tpu.memory_space<vmem>>, vector<1x128xf32>
    %6 = vector.shape_cast %5 : vector<1x128xf32> to vector<1x128xf32>
    %7 = vector.broadcast %6 : vector<1x128xf32> to vector<8x128xf32>
    %c0_2 = arith.constant 0 : index
    %8 = arith.index_cast %4 : i32 to index
    %c0_3 = arith.constant 0 : index
    %9 = vector.load %arg6[%c0_2, %8, %c0_3] : memref<4x18x18xf32, #tpu.memory_space<vmem>>, vector<1x10x18xf32>
    %10 = vector.shape_cast %9 : vector<1x10x18xf32> to vector<10x18xf32>
    %11 = vector.extract_strided_slice %10 {offsets = [0, 0], sizes = [10, 16], strides = [1, 1]} : vector<10x18xf32> to vector<10x16xf32>
    %12 = tpu.concatenate %11, %11, %11, %11, %11, %11, %11, %11 in 1 : vector<10x16xf32>, vector<10x16xf32>, vector<10x16xf32>, vector<10x16xf32>, vector<10x16xf32>, vector<10x16xf32>, vector<10x16xf32>, vector<10x16xf32> -> vector<10x128xf32>
    %c0_4 = arith.constant 0 : index
    %c0_5 = arith.constant 0 : index
    %13 = vector.load %arg3[%c0_4, %c0_5] : memref<36x128xf32, #tpu.memory_space<vmem>>, vector<1x128xf32>
    %14 = vector.extract_strided_slice %12 {offsets = [0, 0], sizes = [8, 128], strides = [1, 1]} : vector<10x128xf32> to vector<8x128xf32>
    %15 = vector.broadcast %13 : vector<1x128xf32> to vector<8x128xf32>
    %16 = arith.mulf %15, %14 : vector<8x128xf32>
    %17 = arith.addf %7, %16 : vector<8x128xf32>
    %c3 = arith.constant 3 : index
    %c0_6 = arith.constant 0 : index
    %18 = vector.load %arg3[%c3, %c0_6] : memref<36x128xf32, #tpu.memory_space<vmem>>, vector<1x128xf32>
    %19 = vector.extract_strided_slice %12 {offsets = [1, 0], sizes = [8, 128], strides = [1, 1]} : vector<10x128xf32> to vector<8x128xf32>
    %20 = vector.broadcast %18 : vector<1x128xf32> to vector<8x128xf32>
    %21 = arith.mulf %20, %19 : vector<8x128xf32>
    %22 = arith.addf %17, %21 : vector<8x128xf32>
    %c6 = arith.constant 6 : index
    %c0_7 = arith.constant 0 : index
    %23 = vector.load %arg3[%c6, %c0_7] : memref<36x128xf32, #tpu.memory_space<vmem>>, vector<1x128xf32>
    %24 = vector.extract_strided_slice %12 {offsets = [2, 0], sizes = [8, 128], strides = [1, 1]} : vector<10x128xf32> to vector<8x128xf32>
    %25 = vector.broadcast %23 : vector<1x128xf32> to vector<8x128xf32>
    %26 = arith.mulf %25, %24 : vector<8x128xf32>
    %27 = arith.addf %22, %26 : vector<8x128xf32>
    %28 = vector.extract_strided_slice %10 {offsets = [0, 1], sizes = [10, 16], strides = [1, 1]} : vector<10x18xf32> to vector<10x16xf32>
    %29 = tpu.concatenate %28, %28, %28, %28, %28, %28, %28, %28 in 1 : vector<10x16xf32>, vector<10x16xf32>, vector<10x16xf32>, vector<10x16xf32>, vector<10x16xf32>, vector<10x16xf32>, vector<10x16xf32>, vector<10x16xf32> -> vector<10x128xf32>
    %c1 = arith.constant 1 : index
    %c0_8 = arith.constant 0 : index
    %30 = vector.load %arg3[%c1, %c0_8] : memref<36x128xf32, #tpu.memory_space<vmem>>, vector<1x128xf32>
    %31 = vector.extract_strided_slice %29 {offsets = [0, 0], sizes = [8, 128], strides = [1, 1]} : vector<10x128xf32> to vector<8x128xf32>
    %32 = vector.broadcast %30 : vector<1x128xf32> to vector<8x128xf32>
    %33 = arith.mulf %32, %31 : vector<8x128xf32>
    %34 = arith.addf %27, %33 : vector<8x128xf32>
    %c4 = arith.constant 4 : index
    %c0_9 = arith.constant 0 : index
    %35 = vector.load %arg3[%c4, %c0_9] : memref<36x128xf32, #tpu.memory_space<vmem>>, vector<1x128xf32>
    %36 = vector.extract_strided_slice %29 {offsets = [1, 0], sizes = [8, 128], strides = [1, 1]} : vector<10x128xf32> to vector<8x128xf32>
    %37 = vector.broadcast %35 : vector<1x128xf32> to vector<8x128xf32>
    %38 = arith.mulf %37, %36 : vector<8x128xf32>
    %39 = arith.addf %34, %38 : vector<8x128xf32>
    %c7 = arith.constant 7 : index
    %c0_10 = arith.constant 0 : index
    %40 = vector.load %arg3[%c7, %c0_10] : memref<36x128xf32, #tpu.memory_space<vmem>>, vector<1x128xf32>
    %41 = vector.extract_strided_slice %29 {offsets = [2, 0], sizes = [8, 128], strides = [1, 1]} : vector<10x128xf32> to vector<8x128xf32>
    %42 = vector.broadcast %40 : vector<1x128xf32> to vector<8x128xf32>
    %43 = arith.mulf %42, %41 : vector<8x128xf32>
    %44 = arith.addf %39, %43 : vector<8x128xf32>
    %45 = vector.extract_strided_slice %10 {offsets = [0, 2], sizes = [10, 16], strides = [1, 1]} : vector<10x18xf32> to vector<10x16xf32>
    %46 = tpu.concatenate %45, %45, %45, %45, %45, %45, %45, %45 in 1 : vector<10x16xf32>, vector<10x16xf32>, vector<10x16xf32>, vector<10x16xf32>, vector<10x16xf32>, vector<10x16xf32>, vector<10x16xf32>, vector<10x16xf32> -> vector<10x128xf32>
    %c2 = arith.constant 2 : index
    %c0_11 = arith.constant 0 : index
    %47 = vector.load %arg3[%c2, %c0_11] : memref<36x128xf32, #tpu.memory_space<vmem>>, vector<1x128xf32>
    %48 = vector.extract_strided_slice %46 {offsets = [0, 0], sizes = [8, 128], strides = [1, 1]} : vector<10x128xf32> to vector<8x128xf32>
    %49 = vector.broadcast %47 : vector<1x128xf32> to vector<8x128xf32>
    %50 = arith.mulf %49, %48 : vector<8x128xf32>
    %51 = arith.addf %44, %50 : vector<8x128xf32>
    %c5 = arith.constant 5 : index
    %c0_12 = arith.constant 0 : index
    %52 = vector.load %arg3[%c5, %c0_12] : memref<36x128xf32, #tpu.memory_space<vmem>>, vector<1x128xf32>
    %53 = vector.extract_strided_slice %46 {offsets = [1, 0], sizes = [8, 128], strides = [1, 1]} : vector<10x128xf32> to vector<8x128xf32>
    %54 = vector.broadcast %52 : vector<1x128xf32> to vector<8x128xf32>
    %55 = arith.mulf %54, %53 : vector<8x128xf32>
    %56 = arith.addf %51, %55 : vector<8x128xf32>
    %c8 = arith.constant 8 : index
    %c0_13 = arith.constant 0 : index
    %57 = vector.load %arg3[%c8, %c0_13] : memref<36x128xf32, #tpu.memory_space<vmem>>, vector<1x128xf32>
    %58 = vector.extract_strided_slice %46 {offsets = [2, 0], sizes = [8, 128], strides = [1, 1]} : vector<10x128xf32> to vector<8x128xf32>
    %59 = vector.broadcast %57 : vector<1x128xf32> to vector<8x128xf32>
    %60 = arith.mulf %59, %58 : vector<8x128xf32>
    %61 = arith.addf %56, %60 : vector<8x128xf32>
    %c1_14 = arith.constant 1 : index
    %62 = arith.index_cast %4 : i32 to index
    %c0_15 = arith.constant 0 : index
    %63 = vector.load %arg6[%c1_14, %62, %c0_15] : memref<4x18x18xf32, #tpu.memory_space<vmem>>, vector<1x10x18xf32>
    %64 = vector.shape_cast %63 : vector<1x10x18xf32> to vector<10x18xf32>
    %65 = vector.extract_strided_slice %64 {offsets = [0, 0], sizes = [10, 16], strides = [1, 1]} : vector<10x18xf32> to vector<10x16xf32>
    %66 = tpu.concatenate %65, %65, %65, %65, %65, %65, %65, %65 in 1 : vector<10x16xf32>, vector<10x16xf32>, vector<10x16xf32>, vector<10x16xf32>, vector<10x16xf32>, vector<10x16xf32>, vector<10x16xf32>, vector<10x16xf32> -> vector<10x128xf32>
    %c9 = arith.constant 9 : index
    %c0_16 = arith.constant 0 : index
    %67 = vector.load %arg3[%c9, %c0_16] : memref<36x128xf32, #tpu.memory_space<vmem>>, vector<1x128xf32>
    %68 = vector.extract_strided_slice %66 {offsets = [0, 0], sizes = [8, 128], strides = [1, 1]} : vector<10x128xf32> to vector<8x128xf32>
    %69 = vector.broadcast %67 : vector<1x128xf32> to vector<8x128xf32>
    %70 = arith.mulf %69, %68 : vector<8x128xf32>
    %71 = arith.addf %61, %70 : vector<8x128xf32>
    %c12 = arith.constant 12 : index
    %c0_17 = arith.constant 0 : index
    %72 = vector.load %arg3[%c12, %c0_17] : memref<36x128xf32, #tpu.memory_space<vmem>>, vector<1x128xf32>
    %73 = vector.extract_strided_slice %66 {offsets = [1, 0], sizes = [8, 128], strides = [1, 1]} : vector<10x128xf32> to vector<8x128xf32>
    %74 = vector.broadcast %72 : vector<1x128xf32> to vector<8x128xf32>
    %75 = arith.mulf %74, %73 : vector<8x128xf32>
    %76 = arith.addf %71, %75 : vector<8x128xf32>
    %c15 = arith.constant 15 : index
    %c0_18 = arith.constant 0 : index
    %77 = vector.load %arg3[%c15, %c0_18] : memref<36x128xf32, #tpu.memory_space<vmem>>, vector<1x128xf32>
    %78 = vector.extract_strided_slice %66 {offsets = [2, 0], sizes = [8, 128], strides = [1, 1]} : vector<10x128xf32> to vector<8x128xf32>
    %79 = vector.broadcast %77 : vector<1x128xf32> to vector<8x128xf32>
    %80 = arith.mulf %79, %78 : vector<8x128xf32>
    %81 = arith.addf %76, %80 : vector<8x128xf32>
    %82 = vector.extract_strided_slice %64 {offsets = [0, 1], sizes = [10, 16], strides = [1, 1]} : vector<10x18xf32> to vector<10x16xf32>
    %83 = tpu.concatenate %82, %82, %82, %82, %82, %82, %82, %82 in 1 : vector<10x16xf32>, vector<10x16xf32>, vector<10x16xf32>, vector<10x16xf32>, vector<10x16xf32>, vector<10x16xf32>, vector<10x16xf32>, vector<10x16xf32> -> vector<10x128xf32>
    %c10 = arith.constant 10 : index
    %c0_19 = arith.constant 0 : index
    %84 = vector.load %arg3[%c10, %c0_19] : memref<36x128xf32, #tpu.memory_space<vmem>>, vector<1x128xf32>
    %85 = vector.extract_strided_slice %83 {offsets = [0, 0], sizes = [8, 128], strides = [1, 1]} : vector<10x128xf32> to vector<8x128xf32>
    %86 = vector.broadcast %84 : vector<1x128xf32> to vector<8x128xf32>
    %87 = arith.mulf %86, %85 : vector<8x128xf32>
    %88 = arith.addf %81, %87 : vector<8x128xf32>
    %c13 = arith.constant 13 : index
    %c0_20 = arith.constant 0 : index
    %89 = vector.load %arg3[%c13, %c0_20] : memref<36x128xf32, #tpu.memory_space<vmem>>, vector<1x128xf32>
    %90 = vector.extract_strided_slice %83 {offsets = [1, 0], sizes = [8, 128], strides = [1, 1]} : vector<10x128xf32> to vector<8x128xf32>
    %91 = vector.broadcast %89 : vector<1x128xf32> to vector<8x128xf32>
    %92 = arith.mulf %91, %90 : vector<8x128xf32>
    %93 = arith.addf %88, %92 : vector<8x128xf32>
    %c16 = arith.constant 16 : index
    %c0_21 = arith.constant 0 : index
    %94 = vector.load %arg3[%c16, %c0_21] : memref<36x128xf32, #tpu.memory_space<vmem>>, vector<1x128xf32>
    %95 = vector.extract_strided_slice %83 {offsets = [2, 0], sizes = [8, 128], strides = [1, 1]} : vector<10x128xf32> to vector<8x128xf32>
    %96 = vector.broadcast %94 : vector<1x128xf32> to vector<8x128xf32>
    %97 = arith.mulf %96, %95 : vector<8x128xf32>
    %98 = arith.addf %93, %97 : vector<8x128xf32>
    %99 = vector.extract_strided_slice %64 {offsets = [0, 2], sizes = [10, 16], strides = [1, 1]} : vector<10x18xf32> to vector<10x16xf32>
    %100 = tpu.concatenate %99, %99, %99, %99, %99, %99, %99, %99 in 1 : vector<10x16xf32>, vector<10x16xf32>, vector<10x16xf32>, vector<10x16xf32>, vector<10x16xf32>, vector<10x16xf32>, vector<10x16xf32>, vector<10x16xf32> -> vector<10x128xf32>
    %c11 = arith.constant 11 : index
    %c0_22 = arith.constant 0 : index
    %101 = vector.load %arg3[%c11, %c0_22] : memref<36x128xf32, #tpu.memory_space<vmem>>, vector<1x128xf32>
    %102 = vector.extract_strided_slice %100 {offsets = [0, 0], sizes = [8, 128], strides = [1, 1]} : vector<10x128xf32> to vector<8x128xf32>
    %103 = vector.broadcast %101 : vector<1x128xf32> to vector<8x128xf32>
    %104 = arith.mulf %103, %102 : vector<8x128xf32>
    %105 = arith.addf %98, %104 : vector<8x128xf32>
    %c14 = arith.constant 14 : index
    %c0_23 = arith.constant 0 : index
    %106 = vector.load %arg3[%c14, %c0_23] : memref<36x128xf32, #tpu.memory_space<vmem>>, vector<1x128xf32>
    %107 = vector.extract_strided_slice %100 {offsets = [1, 0], sizes = [8, 128], strides = [1, 1]} : vector<10x128xf32> to vector<8x128xf32>
    %108 = vector.broadcast %106 : vector<1x128xf32> to vector<8x128xf32>
    %109 = arith.mulf %108, %107 : vector<8x128xf32>
    %110 = arith.addf %105, %109 : vector<8x128xf32>
    %c17 = arith.constant 17 : index
    %c0_24 = arith.constant 0 : index
    %111 = vector.load %arg3[%c17, %c0_24] : memref<36x128xf32, #tpu.memory_space<vmem>>, vector<1x128xf32>
    %112 = vector.extract_strided_slice %100 {offsets = [2, 0], sizes = [8, 128], strides = [1, 1]} : vector<10x128xf32> to vector<8x128xf32>
    %113 = vector.broadcast %111 : vector<1x128xf32> to vector<8x128xf32>
    %114 = arith.mulf %113, %112 : vector<8x128xf32>
    %115 = arith.addf %110, %114 : vector<8x128xf32>
    %c2_25 = arith.constant 2 : index
    %116 = arith.index_cast %4 : i32 to index
    %c0_26 = arith.constant 0 : index
    %117 = vector.load %arg6[%c2_25, %116, %c0_26] : memref<4x18x18xf32, #tpu.memory_space<vmem>>, vector<1x10x18xf32>
    %118 = vector.shape_cast %117 : vector<1x10x18xf32> to vector<10x18xf32>
    %119 = vector.extract_strided_slice %118 {offsets = [0, 0], sizes = [10, 16], strides = [1, 1]} : vector<10x18xf32> to vector<10x16xf32>
    %120 = tpu.concatenate %119, %119, %119, %119, %119, %119, %119, %119 in 1 : vector<10x16xf32>, vector<10x16xf32>, vector<10x16xf32>, vector<10x16xf32>, vector<10x16xf32>, vector<10x16xf32>, vector<10x16xf32>, vector<10x16xf32> -> vector<10x128xf32>
    %c18 = arith.constant 18 : index
    %c0_27 = arith.constant 0 : index
    %121 = vector.load %arg3[%c18, %c0_27] : memref<36x128xf32, #tpu.memory_space<vmem>>, vector<1x128xf32>
    %122 = vector.extract_strided_slice %120 {offsets = [0, 0], sizes = [8, 128], strides = [1, 1]} : vector<10x128xf32> to vector<8x128xf32>
    %123 = vector.broadcast %121 : vector<1x128xf32> to vector<8x128xf32>
    %124 = arith.mulf %123, %122 : vector<8x128xf32>
    %125 = arith.addf %115, %124 : vector<8x128xf32>
    %c21 = arith.constant 21 : index
    %c0_28 = arith.constant 0 : index
    %126 = vector.load %arg3[%c21, %c0_28] : memref<36x128xf32, #tpu.memory_space<vmem>>, vector<1x128xf32>
    %127 = vector.extract_strided_slice %120 {offsets = [1, 0], sizes = [8, 128], strides = [1, 1]} : vector<10x128xf32> to vector<8x128xf32>
    %128 = vector.broadcast %126 : vector<1x128xf32> to vector<8x128xf32>
    %129 = arith.mulf %128, %127 : vector<8x128xf32>
    %130 = arith.addf %125, %129 : vector<8x128xf32>
    %c24 = arith.constant 24 : index
    %c0_29 = arith.constant 0 : index
    %131 = vector.load %arg3[%c24, %c0_29] : memref<36x128xf32, #tpu.memory_space<vmem>>, vector<1x128xf32>
    %132 = vector.extract_strided_slice %120 {offsets = [2, 0], sizes = [8, 128], strides = [1, 1]} : vector<10x128xf32> to vector<8x128xf32>
    %133 = vector.broadcast %131 : vector<1x128xf32> to vector<8x128xf32>
    %134 = arith.mulf %133, %132 : vector<8x128xf32>
    %135 = arith.addf %130, %134 : vector<8x128xf32>
    %136 = vector.extract_strided_slice %118 {offsets = [0, 1], sizes = [10, 16], strides = [1, 1]} : vector<10x18xf32> to vector<10x16xf32>
    %137 = tpu.concatenate %136, %136, %136, %136, %136, %136, %136, %136 in 1 : vector<10x16xf32>, vector<10x16xf32>, vector<10x16xf32>, vector<10x16xf32>, vector<10x16xf32>, vector<10x16xf32>, vector<10x16xf32>, vector<10x16xf32> -> vector<10x128xf32>
    %c19 = arith.constant 19 : index
    %c0_30 = arith.constant 0 : index
    %138 = vector.load %arg3[%c19, %c0_30] : memref<36x128xf32, #tpu.memory_space<vmem>>, vector<1x128xf32>
    %139 = vector.extract_strided_slice %137 {offsets = [0, 0], sizes = [8, 128], strides = [1, 1]} : vector<10x128xf32> to vector<8x128xf32>
    %140 = vector.broadcast %138 : vector<1x128xf32> to vector<8x128xf32>
    %141 = arith.mulf %140, %139 : vector<8x128xf32>
    %142 = arith.addf %135, %141 : vector<8x128xf32>
    %c22 = arith.constant 22 : index
    %c0_31 = arith.constant 0 : index
    %143 = vector.load %arg3[%c22, %c0_31] : memref<36x128xf32, #tpu.memory_space<vmem>>, vector<1x128xf32>
    %144 = vector.extract_strided_slice %137 {offsets = [1, 0], sizes = [8, 128], strides = [1, 1]} : vector<10x128xf32> to vector<8x128xf32>
    %145 = vector.broadcast %143 : vector<1x128xf32> to vector<8x128xf32>
    %146 = arith.mulf %145, %144 : vector<8x128xf32>
    %147 = arith.addf %142, %146 : vector<8x128xf32>
    %c25 = arith.constant 25 : index
    %c0_32 = arith.constant 0 : index
    %148 = vector.load %arg3[%c25, %c0_32] : memref<36x128xf32, #tpu.memory_space<vmem>>, vector<1x128xf32>
    %149 = vector.extract_strided_slice %137 {offsets = [2, 0], sizes = [8, 128], strides = [1, 1]} : vector<10x128xf32> to vector<8x128xf32>
    %150 = vector.broadcast %148 : vector<1x128xf32> to vector<8x128xf32>
    %151 = arith.mulf %150, %149 : vector<8x128xf32>
    %152 = arith.addf %147, %151 : vector<8x128xf32>
    %153 = vector.extract_strided_slice %118 {offsets = [0, 2], sizes = [10, 16], strides = [1, 1]} : vector<10x18xf32> to vector<10x16xf32>
    %154 = tpu.concatenate %153, %153, %153, %153, %153, %153, %153, %153 in 1 : vector<10x16xf32>, vector<10x16xf32>, vector<10x16xf32>, vector<10x16xf32>, vector<10x16xf32>, vector<10x16xf32>, vector<10x16xf32>, vector<10x16xf32> -> vector<10x128xf32>
    %c20 = arith.constant 20 : index
    %c0_33 = arith.constant 0 : index
    %155 = vector.load %arg3[%c20, %c0_33] : memref<36x128xf32, #tpu.memory_space<vmem>>, vector<1x128xf32>
    %156 = vector.extract_strided_slice %154 {offsets = [0, 0], sizes = [8, 128], strides = [1, 1]} : vector<10x128xf32> to vector<8x128xf32>
    %157 = vector.broadcast %155 : vector<1x128xf32> to vector<8x128xf32>
    %158 = arith.mulf %157, %156 : vector<8x128xf32>
    %159 = arith.addf %152, %158 : vector<8x128xf32>
    %c23 = arith.constant 23 : index
    %c0_34 = arith.constant 0 : index
    %160 = vector.load %arg3[%c23, %c0_34] : memref<36x128xf32, #tpu.memory_space<vmem>>, vector<1x128xf32>
    %161 = vector.extract_strided_slice %154 {offsets = [1, 0], sizes = [8, 128], strides = [1, 1]} : vector<10x128xf32> to vector<8x128xf32>
    %162 = vector.broadcast %160 : vector<1x128xf32> to vector<8x128xf32>
    %163 = arith.mulf %162, %161 : vector<8x128xf32>
    %164 = arith.addf %159, %163 : vector<8x128xf32>
    %c26 = arith.constant 26 : index
    %c0_35 = arith.constant 0 : index
    %165 = vector.load %arg3[%c26, %c0_35] : memref<36x128xf32, #tpu.memory_space<vmem>>, vector<1x128xf32>
    %166 = vector.extract_strided_slice %154 {offsets = [2, 0], sizes = [8, 128], strides = [1, 1]} : vector<10x128xf32> to vector<8x128xf32>
    %167 = vector.broadcast %165 : vector<1x128xf32> to vector<8x128xf32>
    %168 = arith.mulf %167, %166 : vector<8x128xf32>
    %169 = arith.addf %164, %168 : vector<8x128xf32>
    %c3_36 = arith.constant 3 : index
    %170 = arith.index_cast %4 : i32 to index
    %c0_37 = arith.constant 0 : index
    %171 = vector.load %arg6[%c3_36, %170, %c0_37] : memref<4x18x18xf32, #tpu.memory_space<vmem>>, vector<1x10x18xf32>
    %172 = vector.shape_cast %171 : vector<1x10x18xf32> to vector<10x18xf32>
    %173 = vector.extract_strided_slice %172 {offsets = [0, 0], sizes = [10, 16], strides = [1, 1]} : vector<10x18xf32> to vector<10x16xf32>
    %174 = tpu.concatenate %173, %173, %173, %173, %173, %173, %173, %173 in 1 : vector<10x16xf32>, vector<10x16xf32>, vector<10x16xf32>, vector<10x16xf32>, vector<10x16xf32>, vector<10x16xf32>, vector<10x16xf32>, vector<10x16xf32> -> vector<10x128xf32>
    %c27 = arith.constant 27 : index
    %c0_38 = arith.constant 0 : index
    %175 = vector.load %arg3[%c27, %c0_38] : memref<36x128xf32, #tpu.memory_space<vmem>>, vector<1x128xf32>
    %176 = vector.extract_strided_slice %174 {offsets = [0, 0], sizes = [8, 128], strides = [1, 1]} : vector<10x128xf32> to vector<8x128xf32>
    %177 = vector.broadcast %175 : vector<1x128xf32> to vector<8x128xf32>
    %178 = arith.mulf %177, %176 : vector<8x128xf32>
    %179 = arith.addf %169, %178 : vector<8x128xf32>
    %c30 = arith.constant 30 : index
    %c0_39 = arith.constant 0 : index
    %180 = vector.load %arg3[%c30, %c0_39] : memref<36x128xf32, #tpu.memory_space<vmem>>, vector<1x128xf32>
    %181 = vector.extract_strided_slice %174 {offsets = [1, 0], sizes = [8, 128], strides = [1, 1]} : vector<10x128xf32> to vector<8x128xf32>
    %182 = vector.broadcast %180 : vector<1x128xf32> to vector<8x128xf32>
    %183 = arith.mulf %182, %181 : vector<8x128xf32>
    %184 = arith.addf %179, %183 : vector<8x128xf32>
    %c33 = arith.constant 33 : index
    %c0_40 = arith.constant 0 : index
    %185 = vector.load %arg3[%c33, %c0_40] : memref<36x128xf32, #tpu.memory_space<vmem>>, vector<1x128xf32>
    %186 = vector.extract_strided_slice %174 {offsets = [2, 0], sizes = [8, 128], strides = [1, 1]} : vector<10x128xf32> to vector<8x128xf32>
    %187 = vector.broadcast %185 : vector<1x128xf32> to vector<8x128xf32>
    %188 = arith.mulf %187, %186 : vector<8x128xf32>
    %189 = arith.addf %184, %188 : vector<8x128xf32>
    %190 = vector.extract_strided_slice %172 {offsets = [0, 1], sizes = [10, 16], strides = [1, 1]} : vector<10x18xf32> to vector<10x16xf32>
    %191 = tpu.concatenate %190, %190, %190, %190, %190, %190, %190, %190 in 1 : vector<10x16xf32>, vector<10x16xf32>, vector<10x16xf32>, vector<10x16xf32>, vector<10x16xf32>, vector<10x16xf32>, vector<10x16xf32>, vector<10x16xf32> -> vector<10x128xf32>
    %c28 = arith.constant 28 : index
    %c0_41 = arith.constant 0 : index
    %192 = vector.load %arg3[%c28, %c0_41] : memref<36x128xf32, #tpu.memory_space<vmem>>, vector<1x128xf32>
    %193 = vector.extract_strided_slice %191 {offsets = [0, 0], sizes = [8, 128], strides = [1, 1]} : vector<10x128xf32> to vector<8x128xf32>
    %194 = vector.broadcast %192 : vector<1x128xf32> to vector<8x128xf32>
    %195 = arith.mulf %194, %193 : vector<8x128xf32>
    %196 = arith.addf %189, %195 : vector<8x128xf32>
    %c31 = arith.constant 31 : index
    %c0_42 = arith.constant 0 : index
    %197 = vector.load %arg3[%c31, %c0_42] : memref<36x128xf32, #tpu.memory_space<vmem>>, vector<1x128xf32>
    %198 = vector.extract_strided_slice %191 {offsets = [1, 0], sizes = [8, 128], strides = [1, 1]} : vector<10x128xf32> to vector<8x128xf32>
    %199 = vector.broadcast %197 : vector<1x128xf32> to vector<8x128xf32>
    %200 = arith.mulf %199, %198 : vector<8x128xf32>
    %201 = arith.addf %196, %200 : vector<8x128xf32>
    %c34 = arith.constant 34 : index
    %c0_43 = arith.constant 0 : index
    %202 = vector.load %arg3[%c34, %c0_43] : memref<36x128xf32, #tpu.memory_space<vmem>>, vector<1x128xf32>
    %203 = vector.extract_strided_slice %191 {offsets = [2, 0], sizes = [8, 128], strides = [1, 1]} : vector<10x128xf32> to vector<8x128xf32>
    %204 = vector.broadcast %202 : vector<1x128xf32> to vector<8x128xf32>
    %205 = arith.mulf %204, %203 : vector<8x128xf32>
    %206 = arith.addf %201, %205 : vector<8x128xf32>
    %207 = vector.extract_strided_slice %172 {offsets = [0, 2], sizes = [10, 16], strides = [1, 1]} : vector<10x18xf32> to vector<10x16xf32>
    %208 = tpu.concatenate %207, %207, %207, %207, %207, %207, %207, %207 in 1 : vector<10x16xf32>, vector<10x16xf32>, vector<10x16xf32>, vector<10x16xf32>, vector<10x16xf32>, vector<10x16xf32>, vector<10x16xf32>, vector<10x16xf32> -> vector<10x128xf32>
    %c29 = arith.constant 29 : index
    %c0_44 = arith.constant 0 : index
    %209 = vector.load %arg3[%c29, %c0_44] : memref<36x128xf32, #tpu.memory_space<vmem>>, vector<1x128xf32>
    %210 = vector.extract_strided_slice %208 {offsets = [0, 0], sizes = [8, 128], strides = [1, 1]} : vector<10x128xf32> to vector<8x128xf32>
    %211 = vector.broadcast %209 : vector<1x128xf32> to vector<8x128xf32>
    %212 = arith.mulf %211, %210 : vector<8x128xf32>
    %213 = arith.addf %206, %212 : vector<8x128xf32>
    %c32 = arith.constant 32 : index
    %c0_45 = arith.constant 0 : index
    %214 = vector.load %arg3[%c32, %c0_45] : memref<36x128xf32, #tpu.memory_space<vmem>>, vector<1x128xf32>
    %215 = vector.extract_strided_slice %208 {offsets = [1, 0], sizes = [8, 128], strides = [1, 1]} : vector<10x128xf32> to vector<8x128xf32>
    %216 = vector.broadcast %214 : vector<1x128xf32> to vector<8x128xf32>
    %217 = arith.mulf %216, %215 : vector<8x128xf32>
    %218 = arith.addf %213, %217 : vector<8x128xf32>
    %c35 = arith.constant 35 : index
    %c0_46 = arith.constant 0 : index
    %219 = vector.load %arg3[%c35, %c0_46] : memref<36x128xf32, #tpu.memory_space<vmem>>, vector<1x128xf32>
    %220 = vector.extract_strided_slice %208 {offsets = [2, 0], sizes = [8, 128], strides = [1, 1]} : vector<10x128xf32> to vector<8x128xf32>
    %221 = vector.broadcast %219 : vector<1x128xf32> to vector<8x128xf32>
    %222 = arith.mulf %221, %220 : vector<8x128xf32>
    %223 = arith.addf %218, %222 : vector<8x128xf32>
    %cst = arith.constant 0.000000e+00 : f32
    %224 = vector.broadcast %cst : f32 to vector<8x128xf32>
    %225 = arith.maximumf %223, %224 : vector<8x128xf32>
    %c0_47 = arith.constant 0 : index
    %c0_48 = arith.constant 0 : index
    %c0_49 = arith.constant 0 : index
    %226 = vector.load %arg5[%c0_47, %c0_48, %c0_49] : memref<1x8x128xf32, #tpu.memory_space<vmem>>, vector<1x8x128xf32>
    %227 = vector.shape_cast %226 : vector<1x8x128xf32> to vector<8x128xf32>
    %228 = vector.shape_cast %225 : vector<8x128xf32> to vector<1x8x128xf32>
    tpu.vector_store %arg5[%c0_47, %c0_48, %c0_49], %228 {strides = array<i32>} : memref<1x8x128xf32, #tpu.memory_space<vmem>>, vector<1x8x128xf32>,
    return
  }
  func.func @transform_0(%arg0: i32, %arg1: i32) -> (i32, i32, i32, i32) {
    %c0_i32 = arith.constant 0 : i32
    %c0_i32_0 = arith.constant 0 : i32
    %c0_i32_1 = arith.constant 0 : i32
    %c0_i32_2 = arith.constant 0 : i32
    return %arg0, %c0_i32, %c0_i32_0, %c0_i32_1 : i32, i32, i32, i32
  }
  func.func @transform_1(%arg0: i32, %arg1: i32) -> (i32, i32) {
    %c0_i32 = arith.constant 0 : i32
    %c0_i32_0 = arith.constant 0 : i32
    %c0_i32_1 = arith.constant 0 : i32
    return %c0_i32, %c0_i32_0 : i32, i32
  }
  func.func @transform_2(%arg0: i32, %arg1: i32) -> (i32, i32) {
    %c0_i32 = arith.constant 0 : i32
    %c0_i32_0 = arith.constant 0 : i32
    %c0_i32_1 = arith.constant 0 : i32
    return %c0_i32, %c0_i32_0 : i32, i32
  }
  func.func @transform_3(%arg0: i32, %arg1: i32) -> (i32, i32, i32) {
    %c0_i32 = arith.constant 0 : i32
    %c0_i32_0 = arith.constant 0 : i32
    return %arg0, %arg1, %c0_i32 : i32, i32, i32
  }
}

</mosaic_0001>

<bundles_post_ra>
// kernel: tpu_custom_call.1
= control target key start
LH: loop header
LB: loop body
LE: loop exit
PB: predicated region body
PF: predicated region fallthrough
CT: control target
= control target key end

     0   :  { %s2829_s0 = inlined_call_operand.hbm [shape: f32[2,4,16,16], index: 0, kind: input, shape index: {}]   ;;  %s2830_s1 = inlined_call_operand.hbm [shape: f32[36,128], index: 1, kind: input, shape index: {}]   ;;  %s2831_s2 = inlined_call_operand.vmem [shape: f32[1,128], index: 2, kind: input, shape index: {}]   ;;  %s2832_s3 = inlined_call_operand.hbm [shape: f32[2,16,128], index: 3, kind: output, shape index: {}]  }
   0x1   :  { %2890 = sst [smem:[#allocation18_spill]] %s2830_s1 }
   0x2   :  { %2891 = sst [smem:[#allocation19_spill]] %s2832_s3 }
   0x3   :  { %8 = vsyncpa [#allocation4], 0 }
   0x4   :  { %10 = vsyncpa [#allocation4 + $0x1], 0 }
   0x5   :  { %11 = vsyncpa [#allocation7], 0 }
   0x6   :  { %12 = vsyncpa [#allocation5], 0 }
   0x7   :  { %14 = vsyncpa [#allocation5 + $0x1], 0  ;;  %s1924_s12 = smov 0   ;;  %s1926_s13 = smov 0  }
   0x8   :  { %s1928_s14 = smov 0   ;;  %s1930_s15 = smov 0  }
   0x9   :  { %s1932_s16 = smov 0   ;;  %s1934_s17 = smov 0  }
   0xa   :  { %s1936_s18 = smov 0   ;;  %s1938_s19 = smov 0  }
   0xb   :  { %s1940_s20 = smov 0   ;;  %s1942_s21 = smov 0  }
   0xc   :  { %s1944_s22 = smov 0  }
   0xd LB: > { %2892 = sst [smem:[#allocation12_spill]] %s1834_s12  ;;  %s1482_s23 = sadd.s32 4294967295, %s1874_s22   ;;  %s1874_s22 = sphi %s1944_s22, %s20_s22   ;;  %s1870_s21 = sphi %s1942_s21, %s2947_s21   ;;  %s1866_s20 = sphi %s1940_s20, %s2938_s20   ;;  %s1862_s19 = sphi %s1938_s19, %s2946_s19   ;;  %s1858_s18 = sphi %s1936_s18, %s2937_s18   ;;  %s1854_s17 = sphi %s1934_s17, %s2945_s17   ;;  %s1850_s16 = sphi %s1932_s16, %s2944_s16   ;;  %s1846_s15 = sphi %s1930_s15, %s2943_s15   ;;  %s1842_s14 = sphi %s1928_s14, %s2942_s14   ;;  %s1838_s13 = sphi %s1926_s13, %s2941_s13   ;;  %s1834_s12 = sphi %s1924_s12, %s2940_s12  }
   0xe   : > { %2893 = sst [smem:[#allocation13_spill]] %s1866_s20  ;;  %s1483_s24 = sadd.s32 4294967294, %s1874_s22  }
   0xf   : > { %p52_p0 = scmp.ne.s32.totalorder %s1850_s16, %s1846_s15  ;;  %p1980_p1 = scmp.eq.s32.totalorder %s1482_s23, 0 }
  0x10   : > { %p119_p2 = scmp.ne.s32.totalorder %s1842_s14, %s1838_s13  ;;  %p120_p3 = scmp.eq.s32.totalorder %s1482_s23, 3 }
  0x11   : > { %p1988_p4 = por %p1980_p1, %p52_p0  ;;  %p125_p5 = scmp.ne.s32.totalorder %s1838_s13, %s1834_s12 }
  0x12   : > { %p1994_p6 = por %p120_p3, %p119_p2  ;;  %p126_p7 = scmp.eq.s32.totalorder %s1483_s24, 3 }
  0x13   : > { %p1484_p8 = scmp.ge.s32.totalorder %s1874_s22, 1  ;;  %p133_p9 = scmp.lt.s32.totalorder %s1874_s22, 5 }
  0x14   : > { %s2896_s27 = scalar_select %p1994_p6, 1, 0 }
  0x15   : > { %p2000_p10 = por %p126_p7, %p125_p5  ;;  %p2004_p11 = pnand %p1484_p8, %p133_p9 }
  0x16   : > { %2897 = sst [smem:[#allocation14_spill]] %s2896_s27  ;;  %s1876_s6 = smov [#allocation6]  }
  0x17   : > { %s2898_s28 = scalar_select %p2000_p10, 1, 0 }
  0x18   : > { %s2901_s1 = sld [smem:[#allocation18_spill]]  ;;  %p1519_p12 = pneg %p2004_p11 }
  0x19   : > { %2899 = sst [smem:[#allocation15_spill]] %s2898_s28  ;;  %s146_s7 = sshll.u32 %s1876_s6, 4  ;;  %s147_s7 = int_to_ptr.vmem [resolvable:$true] %s146_s7 }
  0x1a   : > { %p1520_p13 = pnand %p1519_p12, %p1980_p1  ;;  %s2833_s8 = smov 128  }
  0x1b   : > { %s2834_s9 = smov 8   ;;  %s29_s10 = sadd.s32 1, %s1866_s20 }
  0x1c   : > { %s32_s11 = sadd.s32 1, %s1870_s21  ;;  %p30_p0 = scmp.ge.s32.totalorder %s29_s10, 2 }
  0x1d   : > { %s39_s15 = sadd.s32 1, %s1854_s17  ;;  %p46_p2 = scmp.ne.s32.totalorder %s1854_s17, %s1850_s16 }
  0x1e   : > { %s144_s5 = sshll.u32 %s2901_s1, 4  ;;  %p47_p3 = scmp.eq.s32.totalorder %s1874_s22, 0  ;;  %s145_s5 = int_to_ptr.hbm [resolvable:$true] %s144_s5 }
  0x1f   : > { %1522 = dma.hbm_to_vmem [thread:$0]  (!%p1520_p13), %s145_s5, 640, %s147_s7, [#allocation7], %s2833_s8, %s2833_s8, %s2834_s9  }
  0x20   : > { %s2949_s10 = smov (%p30_p0, %s29_s10), 0  ;;  %s2951_s11 = smov (!%p30_p0, %s32_s11), %s1870_s21 }
  0x21   : > { %2902 = sst [smem:[#allocation16_spill]] %s2949_s10  ;;  %p2027_p5 = por %p47_p3, %p46_p2 }
  0x22   : > { %s105_s24 = ssub.s32 %s1866_s20, %s2949_s10  ;;  %p34_p7 = scmp.ge.s32.totalorder %s2951_s11, 2 }
  0x23   : > { %s109_s30 = sadd.s32 1, %s1842_s14  ;;  %p1532_p8 = scmp.lt.s32.totalorder %s1874_s22, 4 }
  0x24   : > { %s163_s4 = sand.u32 1, %s1854_s17   ;;  %s2953_s11 = smov (%p34_p7, %s2951_s11), 0 }
  0x25   : > { %2904 = sst [smem:[#allocation17_spill]] %s2953_s11  ;;  %s1487_s5 = sshll.u32 %s163_s4, 6 }
  0x26   : > { %s36_s6 = ssub.s32 %s1870_s21, %s2953_s11  ;;  %s1510_s8 = sshll.u32 %s1870_s21, 6 }
  0x27   : > { %p37_p9 = scmp.eq.s32.totalorder %s36_s6, 0  ;;  %s106_s7 = sor.u32 %s105_s24, %s36_s6 }
  0x28   : > { %p107_p12 = scmp.eq.s32.totalorder %s106_s7, 0  ;;  %s172_s28 = scalar_lea.hbm %s2829_s0, %s1510_s8 }
  0x29   : > { %s2042_s9 = scalar_select %p37_p9, %s1854_s17, %s39_s15  }
  0x2a   : > { %s2045_s1 = scalar_select %p107_p12, %s1842_s14, %s109_s30  }
  0x2b   : > { %s167_s12 = scalar_lea.vmem [#allocation3], %s1487_s5  ;;  %s173_s3 = sshll.u32 %s172_s28, 4  ;;  %s174_s3 = int_to_ptr.hbm [resolvable:$true] %s173_s3 }
  0x2c   : > { %s175_s27 = sshll.u32 %s167_s12, 4  ;;  %p1524_p13 = pnand %p1532_p8, %p2027_p5  ;;  %s176_s27 = int_to_ptr.vmem [resolvable:$true] %s175_s27 }
  0x2d   : > { %s164_s11 = scalar_lea.sflag [#allocation4], %s163_s4  ;;  %s2905_s24 = smov 8  }
  0x2e   : > { %s2906_s6 = smov 128   ;;  %187 = sbr.rel (%p2004_p11) target bundleno = 820 (0x334), region = 32 }
  0x2f   : > { %1526 = dma.hbm_to_vmem [thread:$0]  (!%p1524_p13), %s174_s3, 1024, %s176_s27, %s164_s11, %s2906_s6, %s2906_s6, %s2905_s24  }
  0x30   : > { %s189_s20 = sand.u32 (!%p2004_p11), 1, %s1850_s16  }
  0x31   : > { %s1491_s8 = sshll.u32 (!%p2004_p11), %s189_s20, 6  ;;  %s190_s10 = scalar_lea.sflag (!%p2004_p11), [#allocation4], %s189_s20 }
  0x32   : > { %s193_s12 = scalar_lea.vmem (!%p2004_p11), [#allocation3], %s1491_s8 }
  0x33   : > { %1821 = dma.done.wait (%p1988_p4), %s190_s10, 1024  }
  0x34   : > { %1823 = vsyncadd (%p1988_p4), %s190_s10, 4294966272 }
  0x35   : > { %1825 = dma.done.wait (%p1980_p1), [#allocation7], 640  }
  0x36   : > { %1827 = vsyncadd (%p1980_p1), [#allocation7], 4294966656  ;;  %s2843_s3 = sand.u32 1, %s1838_s13   ;;  %p1494_p11 = scmp.ne.s32.totalorder %s1858_s18, 0 }
  0x37   : > { %s2071_s27 = sshll.u32 %s2843_s3, 3  ;;  %s1879_s26 = smov (!%p1494_p11), 1  }
  0x38   : > { %225 = sbr.rel (%p1494_p11) target bundleno = 195 (0xc3), region = 44 }
  0x3d   : > { %v242_v0 = vld [vmem:[%s193_s12 + $0x10] sm:$0xff]  ;;  %v240_v1 = vld [vmem:[%s193_s12] sm:$0xff]  ;;  %v243_v3 = vld [vmem:[%s193_s12 + $0x18] sm:$0xff]  ;;  %vm226_vm0 = vcmask 146432   ;;  %v1880_v8 = vmov 0.0   ;;  %vm229_vm1 = vcmask 140288  }
  0x3e   : > { %260 = vrot.lane.b32.xlu1 %v242_v0, %s1879_s26  ;;  %256 = vrot.lane.b32.xlu0 %v240_v1, %s1879_s26  ;;  %v244_v2 = vld [vmem:[%s193_s12 + $0x20] sm:$0xff]  ;;  %v241_v4 = vld [vmem:[%s193_s12 + $0x8] sm:$0xff]  ;;  %231 = vst.msk [vmem:[#allocation2 + $0x18] sm:$0xff] %vm226_vm0, %v1880_v8  ;;  %vm280_vm2 = vcmask 138248  }
  0x3f   : > { %264 = vrot.lane.b32.xlu2 %v244_v2, %s1879_s26  ;;  %v245_v5 = vld [vmem:[%s193_s12 + $0x28] sm:$0xff]  ;;  %v247_v6 = vld [vmem:[%s193_s12 + $0x38] sm:$0xff]  ;;  %v246_v7 = vld [vmem:[%s193_s12 + $0x30] sm:$0xff]  ;;  %232 = vst.msk [vmem:[#allocation2 + $0x20] sm:$0xff] %vm226_vm0, %v1880_v8 }
  0x40   : > { %227 = vst.msk [vmem:[#allocation2] sm:$0xff] %vm226_vm0, %v1880_v8 }
  0x41   : > { %228 = vst.msk [vmem:[#allocation2 + $0x8] sm:$0xff] %vm226_vm0, %v1880_v8 }
  0x42   : > { %234 = vst.msk [vmem:[#allocation2 + $0x30] sm:$0xff] %vm226_vm0, %v1880_v8 }
  0x43   : > { %235 = vst.msk [vmem:[#allocation2 + $0x38] sm:$0xff] %vm226_vm0, %v1880_v8 }
  0x44   : > { %237 = vst.msk [vmem:[#allocation2 + $0x48] sm:$0xff] %vm226_vm0, %v1880_v8 }
  0x45   : > { %238 = vst.msk [vmem:[#allocation2 + $0x50] sm:$0xff] %vm226_vm0, %v1880_v8 }
  0x46   : > { %262 = vrot.lane.b32.xlu1 %v243_v3, %s1879_s26  ;;  %258 = vrot.lane.b32.xlu0 %v241_v4, %s1879_s26  ;;  %233 = vst.msk [vmem:[#allocation2 + $0x28] sm:$0x3] %vm229_vm1, %v1880_v8 }
  0x47   : > { %266 = vrot.lane.b32.xlu2 %v245_v5, %s1879_s26  ;;  %230 = vst.msk [vmem:[#allocation2 + $0x10] sm:$0x3] %vm229_vm1, %v1880_v8 }
  0x48   : > { %236 = vst.msk [vmem:[#allocation2 + $0x40] sm:$0x3] %vm229_vm1, %v1880_v8 }
  0x49   : > { %239 = vst.msk [vmem:[#allocation2 + $0x58] sm:$0x3] %vm229_vm1, %v1880_v8 }
  0x4e   : > { %270 = vrot.lane.b32.xlu1 %v247_v6, %s1879_s26  ;;  %268 = vrot.lane.b32.xlu0 %v246_v7, %s1879_s26 }
  0x99   : > { %v265_v9 = vpop.permute.xlu2 %264 }
  0x9a   : > { %285 = vst.msk [vmem:[#allocation2 + $0x31] sm:$0xff] %vm280_vm2, %v265_v9 }
  0xa1   : > { %v267_v10 = vpop.permute.xlu2 %266 }
  0xa2   : > { %286 = vst.msk [vmem:[#allocation2 + $0x39] sm:$0xff] %vm280_vm2, %v267_v10 }
  0xb0   : > { %v261_v11 = vpop.permute.xlu1 %260  ;;  %v257_v12 = vpop.permute.xlu0 %256 }
  0xb1   : > { %283 = vst.msk [vmem:[#allocation2 + $0x19] sm:$0xff] %vm280_vm2, %v261_v11 }
  0xb2   : > { %281 = vst.msk [vmem:[#allocation2 + $0x1] sm:$0xff] %vm280_vm2, %v257_v12 }
  0xb8   : > { %v263_v13 = vpop.permute.xlu1 %262  ;;  %v259_v14 = vpop.permute.xlu0 %258 }
  0xb9   : > { %284 = vst.msk [vmem:[#allocation2 + $0x21] sm:$0xff] %vm280_vm2, %v263_v13 }
  0xba   : > { %282 = vst.msk [vmem:[#allocation2 + $0x9] sm:$0xff] %vm280_vm2, %v259_v14 }
  0xc0   : > { %v271_v15 = vpop.permute.xlu1 %270  ;;  %v269_v16 = vpop.permute.xlu0 %268 }
  0xc1   : > { %288 = vst.msk [vmem:[#allocation2 + $0x51] sm:$0xff] %vm280_vm2, %v271_v15 }
  0xc2   : > { %287 = vst.msk [vmem:[#allocation2 + $0x49] sm:$0xff] %vm280_vm2, %v269_v16 }
  0xc3 PF: > { %s1495_s25 = sshll.u32 %s1858_s18, 3  ;;  %s2878_s11 = smov 32   ;;  %vm341_vm3 = vcmask 130048   ;;  %vm344_vm4 = vcmask 261120   ;;  %vm347_vm5 = vcmask 392192   ;;  %vm350_vm6 = vcmask 523264  }
  0xc4   : > { %s2084_s29 = scalar_lea.vmem [#allocation2], %s1495_s25  ;;  %s2880_s15 = smov 16   ;;  %vm353_vm7 = vcmask 654336   ;;  %vm356_vm8 = vcmask 785408   ;;  %vm359_vm9 = vcmask 916480   ;;  %vm372_vm10 = vcmask 1046528  }
  0xc5   : > { %s2876_s23 = smov 48   ;;  %s2874_s30 = smov 64   ;;  %v1651_v7 = vld [vmem:[#allocation6 + $0x3] ss:$0 sm:$0xff]  ;;  %vm384_vm11 = vcmask 1045504  }
  0xc6   : > { %s2872_s4 = smov 80   ;;  %s2870_s5 = smov 96  }
  0xc7   : > { %s2868_s7 = smov 112   ;;  %s2866_s24 = smov 127  }
  0xc8   : > { %s2864_s6 = smov 15   ;;  %s2856_s20 = smov 31  }
  0xc9   : > { %v2087_v17 = vld [vmem:[%s2084_s29] sm:$0xff]  ;;  %v2096_v18 = vld [vmem:[%s2084_s29 + $0x8] sm:$0x3]  ;;  %s2858_s8 = smov 47   ;;  %s2860_s10 = smov 63   ;;  %v2195_v25 = vld [vmem:[%s2084_s29 + $0x18] sm:$0xff] }
  0xca   : > { %305 = vrot.lane.b32.xlu1 %v2087_v17, %s2878_s11  ;;  %299 = vrot.lane.b32.xlu0 %v2087_v17, %s2880_s15  ;;  %s2844_s12 = smov 79   ;;  %s2862_s26 = smov 95   ;;  %v2202_v26 = vld [vmem:[%s2084_s29 + $0x20] sm:$0x3] }
  0xcb   : > { %311 = vrot.lane.b32.xlu2 %v2087_v17, %s2876_s23  ;;  %s2846_s25 = smov 111   ;;  %s2848_s3 = smov 126  }
  0xcc   : > { %s2850_s28 = smov 14  }
  0xd2   : > { %307 = vrot.lane.b32.xlu1 %v2096_v18, %s2878_s11  ;;  %301 = vrot.lane.b32.xlu0 %v2096_v18, %s2880_s15 }
  0xd3   : > { %313 = vrot.lane.b32.xlu2 %v2096_v18, %s2876_s23 }
  0xda   : > { %319 = vrot.lane.b32.xlu1 %v2096_v18, %s2874_s30  ;;  %317 = vrot.lane.b32.xlu0 %v2087_v17, %s2874_s30 }
  0xdb   : > { %323 = vrot.lane.b32.xlu2 %v2087_v17, %s2872_s4 }
  0xe2   : > { %329 = vrot.lane.b32.xlu1 %v2087_v17, %s2870_s5  ;;  %325 = vrot.lane.b32.xlu0 %v2096_v18, %s2872_s4 }
  0xe3   : > { %331 = vrot.lane.b32.xlu2 %v2096_v18, %s2870_s5 }
  0xea   : > { %337 = vrot.lane.b32.xlu1 %v2096_v18, %s2868_s7  ;;  %335 = vrot.lane.b32.xlu0 %v2087_v17, %s2868_s7 }
  0xeb   : > { %390 = vrot.lane.b32.xlu2 %v2087_v17, %s2866_s24 }
  0xf2   : > { %396 = vrot.lane.b32.xlu1 %v2087_v17, %s2864_s6  ;;  %392 = vrot.lane.b32.xlu0 %v2096_v18, %s2866_s24 }
  0xf3   : > { %398 = vrot.lane.b32.xlu2 %v2096_v18, %s2864_s6 }
  0xfa   : > { %404 = vrot.lane.b32.xlu1 %v2096_v18, %s2856_s20  ;;  %402 = vrot.lane.b32.xlu0 %v2087_v17, %s2856_s20 }
  0xfb   : > { %408 = vrot.lane.b32.xlu2 %v2087_v17, %s2858_s8 }
 0x102   : > { %414 = vrot.lane.b32.xlu1 %v2087_v17, %s2860_s10  ;;  %410 = vrot.lane.b32.xlu0 %v2096_v18, %s2858_s8 }
 0x103   : > { %416 = vrot.lane.b32.xlu2 %v2096_v18, %s2860_s10 }
 0x10a   : > { %422 = vrot.lane.b32.xlu1 %v2096_v18, %s2844_s12  ;;  %420 = vrot.lane.b32.xlu0 %v2087_v17, %s2844_s12  ;;  %s2854_s12 = smov 30  }
 0x10b   : > { %426 = vrot.lane.b32.xlu2 %v2087_v17, %s2862_s26 }
 0x112   : > { %432 = vrot.lane.b32.xlu1 %v2087_v17, %s2846_s25  ;;  %428 = vrot.lane.b32.xlu0 %v2096_v18, %s2862_s26 }
 0x113   : > { %434 = vrot.lane.b32.xlu2 %v2096_v18, %s2846_s25  ;;  %s2852_s25 = smov 46  }
 0x11a   : > { %480 = vrot.lane.b32.xlu1 %v2096_v18, %s2848_s3  ;;  %478 = vrot.lane.b32.xlu0 %v2087_v17, %s2848_s3  ;;  %s2888_s3 = smov 62  }
 0x11b   : > { %484 = vrot.lane.b32.xlu2 %v2087_v17, %s2850_s28 }
 0x122   : > { %490 = vrot.lane.b32.xlu1 %v2087_v17, %s2854_s12  ;;  %486 = vrot.lane.b32.xlu0 %v2096_v18, %s2850_s28  ;;  %s2884_s28 = smov 78  }
 0x123   : > { %492 = vrot.lane.b32.xlu2 %v2096_v18, %s2854_s12  ;;  %s2882_s12 = smov 110  }
 0x125   : > { %v2164_v19 = vpop.permute.xlu2 %311 }
 0x12a   : > { %498 = vrot.lane.b32.xlu1 %v2096_v18, %s2852_s25  ;;  %496 = vrot.lane.b32.xlu0 %v2087_v17, %s2852_s25  ;;  %s2886_s25 = smov 94  }
 0x12b   : > { %502 = vrot.lane.b32.xlu2 %v2087_v17, %s2888_s3 }
 0x12d   : > { %v2172_v20 = vpop.permute.xlu2 %313 }
 0x132   : > { %508 = vrot.lane.b32.xlu1 %v2087_v17, %s2884_s28  ;;  %504 = vrot.lane.b32.xlu0 %v2096_v18, %s2888_s3 }
 0x133   : > { %510 = vrot.lane.b32.xlu2 %v2096_v18, %s2884_s28 }
 0x135   : > { %v2180_v21 = vpop.permute.xlu2 %323 }
 0x13a   : > { %516 = vrot.lane.b32.xlu1 %v2096_v18, %s2886_s25  ;;  %514 = vrot.lane.b32.xlu0 %v2087_v17, %s2886_s25 }
 0x13b   : > { %520 = vrot.lane.b32.xlu2 %v2087_v17, %s2882_s12 }
 0x13c   : > { %v2188_v22 = vpop.permute.xlu1 %305  ;;  %v2190_v23 = vpop.permute.xlu0 %299 }
 0x13d   : > { %v2192_v24 = vpop.permute.xlu2 %331  ;;  %v342_v57 = vsel %vm341_vm3, %v2087_v17, %v2190_v23 }
 0x13e   : > { %v345_v59 = vsel %vm344_vm4, %v342_v57, %v2188_v22 }
 0x13f   : > { %v348_v1 = vsel %vm347_vm5, %v345_v59, %v2164_v19 }
 0x142   : > { %572 = vrot.lane.b32.xlu1 %v2195_v25, %s2880_s15  ;;  %522 = vrot.lane.b32.xlu0 %v2096_v18, %s2882_s12 }
 0x143   : > { %574 = vrot.lane.b32.xlu2 %v2202_v26, %s2880_s15 }
 0x144   : > { %v2206_v27 = vpop.permute.xlu1 %307  ;;  %v302_v28 = vpop.permute.xlu0 %301 }
 0x145   : > { %v2208_v29 = vpop.permute.xlu2 %390  ;;  %v343_v58 = vsel %vm341_vm3, %v2096_v18, %v302_v28 }
 0x146   : > { %v346_v60 = vsel %vm344_vm4, %v343_v58, %v2206_v27 }
 0x147   : > { %v349_v0 = vsel %vm347_vm5, %v346_v60, %v2172_v20  ;;  %v1654_v20 = vld [vmem:[#allocation6] ss:$0 sm:$0xff] }
 0x14a   : > { %580 = vrot.lane.b32.xlu1 %v2202_v26, %s2878_s11  ;;  %578 = vrot.lane.b32.xlu0 %v2195_v25, %s2878_s11 }
 0x14b   : > { %584 = vrot.lane.b32.xlu2 %v2195_v25, %s2876_s23 }
 0x14c   : > { %v2216_v30 = vpop.permute.xlu1 %319  ;;  %v2218_v31 = vpop.permute.xlu0 %317 }
 0x14d   : > { %v2220_v32 = vpop.permute.xlu2 %398  ;;  %v352_v2 = vsel %vm350_vm6, %v349_v0, %v2216_v30  ;;  %v351_v3 = vsel %vm350_vm6, %v348_v1, %v2218_v31 }
 0x14e   : > { %v354_v5 = vsel %vm353_vm7, %v351_v3, %v2180_v21 }
 0x152   : > { %590 = vrot.lane.b32.xlu1 %v2195_v25, %s2874_s30  ;;  %586 = vrot.lane.b32.xlu0 %v2202_v26, %s2876_s23 }
 0x153   : > { %592 = vrot.lane.b32.xlu2 %v2202_v26, %s2874_s30 }
 0x154   : > { %v2228_v33 = vpop.permute.xlu1 %329  ;;  %v2230_v34 = vpop.permute.xlu0 %325 }
 0x155   : > { %v2232_v35 = vpop.permute.xlu2 %408  ;;  %v355_v4 = vsel %vm353_vm7, %v352_v2, %v2230_v34  ;;  %v357_v6 = vsel %vm356_vm8, %v354_v5, %v2228_v33  ;;  %v1652_v33 = vld [vmem:[#allocation6 + $0x6] ss:$0 sm:$0xff] }
 0x156   : > { %v358_v8 = vsel %vm356_vm8, %v355_v4, %v2192_v24 }
 0x15a   : > { %598 = vrot.lane.b32.xlu1 %v2202_v26, %s2872_s4  ;;  %596 = vrot.lane.b32.xlu0 %v2195_v25, %s2872_s4 }
 0x15b   : > { %602 = vrot.lane.b32.xlu2 %v2195_v25, %s2870_s5 }
 0x15c   : > { %v2240_v36 = vpop.permute.xlu1 %337  ;;  %v2242_v37 = vpop.permute.xlu0 %335 }
 0x15d   : > { %v2244_v38 = vpop.permute.xlu2 %416  ;;  %v361_v11 = vsel %vm359_vm9, %v358_v8, %v2240_v36  ;;  %v360_v12 = vsel %vm359_vm9, %v357_v6, %v2242_v37  ;;  %v1653_v36 = vld [vmem:[%s2831_s2] ss:$0 sm:$0xff] }
 0x15e   : > { %v369_v19 = vmul.f32 %v1651_v7, %v361_v11  ;;  %v368_v21 = vmul.f32 %v1651_v7, %v360_v12  ;;  %v364_v37 = vmul.f32 %v1654_v20, %v360_v12 }
 0x160   : > { %v365_v58 = vadd.f32 %v1653_v36, %v364_v37 }
 0x162   : > { %608 = vrot.lane.b32.xlu1 %v2195_v25, %s2868_s7  ;;  %604 = vrot.lane.b32.xlu0 %v2202_v26, %s2870_s5  ;;  %s2913_s5 = smov 96  }
 0x163   : > { %610 = vrot.lane.b32.xlu2 %v2202_v26, %s2868_s7  ;;  %s2914_s7 = smov 112  }
 0x164   : > { %v397_v39 = vpop.permute.xlu1 %396  ;;  %v393_v40 = vpop.permute.xlu0 %392 }
 0x165   : > { %v2252_v41 = vpop.permute.xlu2 %426  ;;  %v438_v9 = vsel %vm341_vm3, %v2208_v29, %v397_v39  ;;  %v439_v10 = vsel %vm341_vm3, %v393_v40, %v2220_v32  ;;  %v373_v39 = vrot.slane %v368_v21, 1  ;;  %v1656_v40 = vld [vmem:[#allocation6 + $0x4] ss:$0 sm:$0xff] }
 0x16a   : > { %656 = vrot.lane.b32.xlu1 %v2202_v26, %s2866_s24  ;;  %654 = vrot.lane.b32.xlu0 %v2195_v25, %s2866_s24  ;;  %s2912_s24 = smov 46  }
 0x16b   : > { %660 = vrot.lane.b32.xlu2 %v2195_v25, %s2864_s6 }
 0x16c   : > { %v405_v42 = vpop.permute.xlu1 %404  ;;  %v403_v43 = vpop.permute.xlu0 %402 }
 0x16d   : > { %v2260_v44 = vpop.permute.xlu2 %434  ;;  %v441_v13 = vsel %vm344_vm4, %v439_v10, %v405_v42  ;;  %v440_v14 = vsel %vm344_vm4, %v438_v9, %v403_v43 }
 0x16e   : > { %v442_v22 = vsel %vm347_vm5, %v440_v14, %v2232_v35  ;;  %v374_v35 = vrot.slane %v369_v19, 1  ;;  %v1659_v14 = vld [vmem:[#allocation6 + $0x5] ss:$0 sm:$0xff] }
 0x172   : > { %666 = vrot.lane.b32.xlu1 %v2195_v25, %s2856_s20  ;;  %662 = vrot.lane.b32.xlu0 %v2202_v26, %s2864_s6  ;;  %s2911_s6 = smov 30  }
 0x173   : > { %668 = vrot.lane.b32.xlu2 %v2202_v26, %s2856_s20  ;;  %s2907_s20 = smov 79  }
 0x174   : > { %v2268_v45 = vpop.permute.xlu1 %414  ;;  %v411_v46 = vpop.permute.xlu0 %410 }
 0x175   : > { %v2270_v47 = vpop.permute.xlu2 %484  ;;  %v443_v17 = vsel %vm347_vm5, %v441_v13, %v411_v46  ;;  %v444_v24 = vsel %vm350_vm6, %v442_v22, %v2268_v45 }
 0x176   : > { %v445_v27 = vsel %vm350_vm6, %v443_v17, %v2244_v38  ;;  %v1658_v17 = vld [vmem:[#allocation6 + $0x2] ss:$0 sm:$0xff] }
 0x17a   : > { %674 = vrot.lane.b32.xlu1 %v2202_v26, %s2858_s8  ;;  %672 = vrot.lane.b32.xlu0 %v2195_v25, %s2858_s8  ;;  %s2908_s8 = smov 111  }
 0x17b   : > { %678 = vrot.lane.b32.xlu2 %v2195_v25, %s2860_s10 }
 0x17c   : > { %v2278_v48 = vpop.permute.xlu1 %422  ;;  %v2280_v49 = vpop.permute.xlu0 %420 }
 0x17d   : > { %v2282_v50 = vpop.permute.xlu2 %492  ;;  %v447_v30 = vsel %vm353_vm7, %v445_v27, %v2278_v48  ;;  %v446_v31 = vsel %vm353_vm7, %v444_v24, %v2280_v49 }
 0x17e   : > { %v448_v42 = vsel %vm356_vm8, %v446_v31, %v2252_v41  ;;  %v381_v41 = vmul.f32 %v1652_v33, %v361_v11 }
 0x182   : > { %684 = vrot.lane.b32.xlu1 %v2195_v25, %s2907_s20  ;;  %680 = vrot.lane.b32.xlu0 %v2202_v26, %s2860_s10  ;;  %s2909_s10 = smov 126  }
 0x183   : > { %686 = vrot.lane.b32.xlu2 %v2202_v26, %s2907_s20 }
 0x184   : > { %v2290_v51 = vpop.permute.xlu1 %432  ;;  %v429_v52 = vpop.permute.xlu0 %428 }
 0x185   : > { %v2292_v53 = vpop.permute.xlu2 %502  ;;  %v449_v34 = vsel %vm356_vm8, %v447_v30, %v429_v52  ;;  %v450_v48 = vsel %vm359_vm9, %v448_v42, %v2290_v51  ;;  %v1655_v51 = vld [vmem:[#allocation6 + $0x1] ss:$0 sm:$0xff] }
 0x186   : > { %v451_v49 = vsel %vm359_vm9, %v449_v34, %v2260_v44  ;;  %v458_v59 = vmul.f32 %v1656_v40, %v450_v48  ;;  %v1657_v44 = vld [vmem:[#allocation6 + $0x7] ss:$0 sm:$0xff]  ;;  %v454_v4 = vmul.f32 %v1655_v51, %v450_v48 }
 0x187   : > { %v459_v60 = vmul.f32 %v1656_v40, %v451_v49  ;;  %v469_v9 = vmul.f32 %v1657_v44, %v450_v48  ;;  %v470_v10 = vmul.f32 %v1657_v44, %v451_v49 }
 0x189   : > { %v463_v1 = vrot.slane %v459_v60, 1  ;;  %v473_v19 = vrot.slane %v469_v9, 2  ;;  %v474_v20 = vrot.slane %v470_v10, 2 }
 0x18a   : > { %692 = vrot.lane.b32.xlu1 %v2202_v26, %s2862_s26  ;;  %690 = vrot.lane.b32.xlu0 %v2195_v25, %s2862_s26  ;;  %s2910_s26 = smov 14  }
 0x18b   : > { %696 = vrot.lane.b32.xlu2 %v2195_v25, %s2908_s8  ;;  %v475_v30 = vsel %vm384_vm11, %v473_v19, %v474_v20 }
 0x18c   : > { %v481_v54 = vpop.permute.xlu1 %480  ;;  %v479_v55 = vpop.permute.xlu0 %478 }
 0x18d   : > { %v2300_v56 = vpop.permute.xlu2 %510  ;;  %v526_v23 = vsel %vm341_vm3, %v479_v55, %v2270_v47  ;;  %v380_v55 = vmul.f32 %v1652_v33, %v360_v12 }
 0x192   : > { %742 = vrot.lane.b32.xlu1 %v2195_v25, %s2909_s10  ;;  %698 = vrot.lane.b32.xlu0 %v2202_v26, %s2908_s8 }
 0x193   : > { %744 = vrot.lane.b32.xlu2 %v2202_v26, %s2909_s10 }
 0x194   : > { %v491_v61 = vpop.permute.xlu1 %490  ;;  %v487_v62 = vpop.permute.xlu0 %486 }
 0x195   : > { %v2317_v63 = vpop.permute.xlu2 %520  ;;  %v528_v28 = vsel %vm344_vm4, %v526_v23, %v491_v61  ;;  %v527_v29 = vsel %vm341_vm3, %v481_v54, %v487_v62  ;;  %v386_v61 = vrot.slane %v381_v41, 2  ;;  %v385_v62 = vrot.slane %v380_v55, 2  ;;  %v2438_v41 = vld [vmem:[%s2084_s29 + $0x38] sm:$0x3] }
 0x196   : > { %v529_v38 = vsel %vm344_vm4, %v527_v29, %v2282_v50 }
 0x197   : > { %v387_v8 = vsel %vm384_vm11, %v385_v62, %v386_v61 }
 0x19a   : > { %750 = vrot.lane.b32.xlu1 %v2202_v26, %s2910_s26  ;;  %748 = vrot.lane.b32.xlu0 %v2195_v25, %s2910_s26 }
 0x19b   : > { %754 = vrot.lane.b32.xlu2 %v2195_v25, %s2911_s6 }
 0x19c   : > { %v499_v15 = vpop.permute.xlu1 %498  ;;  %v497_v16 = vpop.permute.xlu0 %496 }
 0x19d   : > { %v2352_v18 = vpop.permute.xlu2 %574  ;;  %v530_v32 = vsel %vm347_vm5, %v528_v28, %v497_v16  ;;  %v531_v43 = vsel %vm347_vm5, %v529_v38, %v499_v15  ;;  %v1660_v15 = vld [vmem:[#allocation6 + $0x8] ss:$0 sm:$0xff] }
 0x19e   : > { %v532_v46 = vsel %vm350_vm6, %v530_v32, %v2292_v53  ;;  %v375_v53 = vsel %vm372_vm10, %v373_v39, %v374_v35  ;;  %v615_v39 = vsel %vm341_vm3, %v2202_v26, %v2352_v18 }
 0x19f   : > { %v377_v0 = vadd.f32 %v375_v53, %v365_v58 }
 0x1a1   : > { %v389_v12 = vadd.f32 %v387_v8, %v377_v0  ;;  %v1661_v0 = vld [vmem:[#allocation6 + $0x9] ss:$0 sm:$0xff] }
 0x1a2   : > { %760 = vrot.lane.b32.xlu1 %v2195_v25, %s2912_s24  ;;  %756 = vrot.lane.b32.xlu0 %v2202_v26, %s2911_s6 }
 0x1a3   : > { %762 = vrot.lane.b32.xlu2 %v2202_v26, %s2912_s24  ;;  %v455_v16 = vadd.f32 %v454_v4, %v389_v12 }
 0x1a4   : > { %v509_v45 = vpop.permute.xlu1 %508  ;;  %v505_v47 = vpop.permute.xlu0 %504 }
 0x1a5   : > { %v534_v50 = vsel %vm353_vm7, %v532_v46, %v509_v45  ;;  %v533_v52 = vsel %vm350_vm6, %v531_v43, %v505_v47  ;;  %v2392_v54 = vpop.permute.xlu2 %584  ;;  %v2429_v45 = vld [vmem:[%s2084_s29 + $0x30] sm:$0xff] }
 0x1a6   : > { %v535_v57 = vsel %vm353_vm7, %v533_v52, %v2300_v56  ;;  %v462_v56 = vrot.slane %v458_v59, 1 }
 0x1a8   : > { %v464_v13 = vsel %vm372_vm10, %v462_v56, %v463_v1  ;;  %v1662_v56 = vld [vmem:[#allocation6 + $0xc] ss:$0 sm:$0xff]  ;;  %v1663_v1 = vld [vmem:[#allocation6 + $0xf] ss:$0 sm:$0xff] }
 0x1a9   : > { %v466_v21 = vadd.f32 %v464_v13, %v455_v16 }
 0x1aa   : > { %768 = vrot.lane.b32.xlu1 %v2202_v26, %s2888_s3  ;;  %766 = vrot.lane.b32.xlu0 %v2195_v25, %s2888_s3 }
 0x1ab   : > { %772 = vrot.lane.b32.xlu2 %v2195_v25, %s2884_s28  ;;  %v477_v33 = vadd.f32 %v475_v30, %v466_v21 }
 0x1ac   : > { %v517_v2 = vpop.permute.xlu1 %516  ;;  %v515_v3 = vpop.permute.xlu0 %514 }
 0x1ad   : > { %v537_v5 = vsel %vm356_vm8, %v535_v57, %v517_v2  ;;  %v536_v6 = vsel %vm356_vm8, %v534_v50, %v515_v3  ;;  %v593_v7 = vpop.permute.xlu2 %592 }
 0x1ae   : > { %v538_v11 = vsel %vm359_vm9, %v536_v6, %v2317_v63 }
 0x1af   : > { %v546_v22 = vmul.f32 %v1659_v14, %v538_v11  ;;  %v557_v23 = vmul.f32 %v1660_v15, %v538_v11  ;;  %v542_v27 = vmul.f32 %v1658_v17, %v538_v11 }
 0x1b1   : > { %v550_v34 = vrot.slane %v546_v22, 1  ;;  %v561_v35 = vrot.slane %v557_v23, 2  ;;  %v543_v38 = vadd.f32 %v542_v27, %v477_v33 }
 0x1b2   : > { %778 = vrot.lane.b32.xlu1 %v2195_v25, %s2886_s25  ;;  %774 = vrot.lane.b32.xlu0 %v2202_v26, %s2884_s28 }
 0x1b3   : > { %780 = vrot.lane.b32.xlu2 %v2202_v26, %s2886_s25 }
 0x1b4   : > { %v573_v63 = vpop.permute.xlu1 %572  ;;  %v523_v24 = vpop.permute.xlu0 %522 }
 0x1b5   : > { %v539_v28 = vsel %vm359_vm9, %v537_v5, %v523_v24  ;;  %v603_v29 = vpop.permute.xlu2 %602  ;;  %v614_v40 = vsel %vm341_vm3, %v2195_v25, %v573_v63 }
 0x1b6   : > { %v547_v31 = vmul.f32 %v1659_v14, %v539_v28  ;;  %v558_v32 = vmul.f32 %v1660_v15, %v539_v28 }
 0x1b8   : > { %v551_v36 = vrot.slane %v547_v31, 1  ;;  %v562_v37 = vrot.slane %v558_v32, 2 }
 0x1ba   : > { %v552_v42 = vsel %vm372_vm10, %v550_v34, %v551_v36  ;;  %v563_v43 = vsel %vm384_vm11, %v561_v35, %v562_v37  ;;  %786 = vrot.lane.b32.xlu1 %v2202_v26, %s2882_s12  ;;  %784 = vrot.lane.b32.xlu0 %v2195_v25, %s2882_s12  ;;  %s2920_s12 = smov 95  }
 0x1bb   : > { %v554_v46 = vadd.f32 %v552_v42, %v543_v38  ;;  %836 = vrot.lane.b32.xlu2 %v2429_v45, %s2880_s15 }
 0x1bc   : > { %v581_v18 = vpop.permute.xlu1 %580  ;;  %v579_v47 = vpop.permute.xlu0 %578 }
 0x1bd   : > { %v617_v48 = vsel %vm344_vm4, %v615_v39, %v581_v18  ;;  %v616_v49 = vsel %vm344_vm4, %v614_v40, %v579_v47  ;;  %v611_v50 = vpop.permute.xlu2 %610  ;;  %v565_v52 = vadd.f32 %v563_v43, %v554_v46 }
 0x1be   : > { %v618_v26 = vsel %vm347_vm5, %v616_v49, %v2392_v54 }
 0x1c2   : > { %842 = vrot.lane.b32.xlu1 %v2429_v45, %s2878_s11  ;;  %838 = vrot.lane.b32.xlu0 %v2438_v41, %s2880_s15  ;;  %s2919_s15 = smov 63  }
 0x1c3   : > { %844 = vrot.lane.b32.xlu2 %v2438_v41, %s2878_s11  ;;  %s2918_s11 = smov 47  }
 0x1c4   : > { %v591_v25 = vpop.permute.xlu1 %590  ;;  %v587_v55 = vpop.permute.xlu0 %586 }
 0x1c5   : > { %v620_v57 = vsel %vm350_vm6, %v618_v26, %v591_v25  ;;  %v619_v58 = vsel %vm347_vm5, %v617_v48, %v587_v55  ;;  %v661_v53 = vpop.permute.xlu2 %660  ;;  %v1664_v48 = vld [vmem:[#allocation6 + $0xa] ss:$0 sm:$0xff] }
 0x1c6   : > { %v621_v54 = vsel %vm350_vm6, %v619_v58, %v593_v7  ;;  %v1665_v58 = vld [vmem:[#allocation6 + $0xd] ss:$0 sm:$0xff] }
 0x1ca   : > { %850 = vrot.lane.b32.xlu1 %v2438_v41, %s2876_s23  ;;  %848 = vrot.lane.b32.xlu0 %v2429_v45, %s2876_s23  ;;  %s2917_s23 = smov 31  }
 0x1cb   : > { %854 = vrot.lane.b32.xlu2 %v2429_v45, %s2874_s30 }
 0x1cc   : > { %v599_v59 = vpop.permute.xlu1 %598  ;;  %v597_v60 = vpop.permute.xlu0 %596 }
 0x1cd   : > { %v623_v51 = vsel %vm353_vm7, %v621_v54, %v599_v59  ;;  %v622_v61 = vsel %vm353_vm7, %v620_v57, %v597_v60  ;;  %v669_v62 = vpop.permute.xlu2 %668 }
 0x1ce   : > { %v624_v44 = vsel %vm356_vm8, %v622_v61, %v603_v29 }
 0x1d2   : > { %860 = vrot.lane.b32.xlu1 %v2429_v45, %s2872_s4  ;;  %856 = vrot.lane.b32.xlu0 %v2438_v41, %s2874_s30  ;;  %s2916_s30 = smov 15  }
 0x1d3   : > { %862 = vrot.lane.b32.xlu2 %v2438_v41, %s2872_s4  ;;  %s2915_s4 = smov 127  }
 0x1d4   : > { %v609_v2 = vpop.permute.xlu1 %608  ;;  %v605_v3 = vpop.permute.xlu0 %604 }
 0x1d5   : > { %v626_v4 = vsel %vm359_vm9, %v624_v44, %v609_v2  ;;  %v625_v5 = vsel %vm356_vm8, %v623_v51, %v605_v3  ;;  %v679_v6 = vpop.permute.xlu2 %678 }
 0x1d6   : > { %v630_v7 = vmul.f32 %v1661_v0, %v626_v4  ;;  %v634_v8 = vmul.f32 %v1662_v56, %v626_v4  ;;  %v645_v9 = vmul.f32 %v1663_v1, %v626_v4  ;;  %v627_v10 = vsel %vm359_vm9, %v625_v5, %v611_v50 }
 0x1d7   : > { %v635_v11 = vmul.f32 %v1662_v56, %v627_v10  ;;  %v646_v12 = vmul.f32 %v1663_v1, %v627_v10 }
 0x1d8   : > { %v631_v13 = vadd.f32 %v630_v7, %v565_v52  ;;  %v638_v14 = vrot.slane %v634_v8, 1  ;;  %v649_v15 = vrot.slane %v645_v9, 2 }
 0x1d9   : > { %v639_v16 = vrot.slane %v635_v11, 1  ;;  %v650_v17 = vrot.slane %v646_v12, 2 }
 0x1da   : > { %868 = vrot.lane.b32.xlu1 %v2438_v41, %s2913_s5  ;;  %866 = vrot.lane.b32.xlu0 %v2429_v45, %s2913_s5 }
 0x1db   : > { %v640_v19 = vsel %vm372_vm10, %v638_v14, %v639_v16  ;;  %v651_v20 = vsel %vm384_vm11, %v649_v15, %v650_v17  ;;  %872 = vrot.lane.b32.xlu2 %v2429_v45, %s2914_s7 }
 0x1dc   : > { %v642_v21 = vadd.f32 %v640_v19, %v631_v13  ;;  %v657_v63 = vpop.permute.xlu1 %656  ;;  %v655_v22 = vpop.permute.xlu0 %654 }
 0x1dd   : > { %v702_v23 = vsel %vm341_vm3, %v655_v22, %v661_v53  ;;  %v687_v24 = vpop.permute.xlu2 %686  ;;  %v1666_v53 = vld [vmem:[#allocation6 + $0x10] ss:$0 sm:$0xff] }
 0x1de   : > { %v653_v27 = vadd.f32 %v651_v20, %v642_v21 }
 0x1e2   : > { %918 = vrot.lane.b32.xlu1 %v2429_v45, %s2915_s4  ;;  %874 = vrot.lane.b32.xlu0 %v2438_v41, %s2914_s7 }
 0x1e3   : > { %920 = vrot.lane.b32.xlu2 %v2438_v41, %s2915_s4 }
 0x1e4   : > { %v667_v28 = vpop.permute.xlu1 %666  ;;  %v663_v29 = vpop.permute.xlu0 %662 }
 0x1e5   : > { %v704_v30 = vsel %vm344_vm4, %v702_v23, %v667_v28  ;;  %v703_v31 = vsel %vm341_vm3, %v657_v63, %v663_v29  ;;  %v697_v32 = vpop.permute.xlu2 %696 }
 0x1e6   : > { %v705_v33 = vsel %vm344_vm4, %v703_v31, %v669_v62 }
 0x1ea   : > { %926 = vrot.lane.b32.xlu1 %v2438_v41, %s2916_s30  ;;  %924 = vrot.lane.b32.xlu0 %v2429_v45, %s2916_s30 }
 0x1eb   : > { %930 = vrot.lane.b32.xlu2 %v2429_v45, %s2917_s23 }
 0x1ec   : > { %v675_v34 = vpop.permute.xlu1 %674  ;;  %v673_v35 = vpop.permute.xlu0 %672 }
 0x1ed   : > { %v707_v36 = vsel %vm347_vm5, %v705_v33, %v675_v34  ;;  %v706_v37 = vsel %vm347_vm5, %v704_v30, %v673_v35  ;;  %v745_v38 = vpop.permute.xlu2 %744  ;;  %v1667_v35 = vld [vmem:[#allocation6 + $0xe] ss:$0 sm:$0xff] }
 0x1ee   : > { %v708_v39 = vsel %vm350_vm6, %v706_v37, %v679_v6  ;;  %v1669_v37 = vld [vmem:[#allocation6 + $0xb] ss:$0 sm:$0xff] }
 0x1f2   : > { %936 = vrot.lane.b32.xlu1 %v2429_v45, %s2918_s11  ;;  %932 = vrot.lane.b32.xlu0 %v2438_v41, %s2917_s23 }
 0x1f3   : > { %938 = vrot.lane.b32.xlu2 %v2438_v41, %s2918_s11 }
 0x1f4   : > { %v685_v40 = vpop.permute.xlu1 %684  ;;  %v681_v42 = vpop.permute.xlu0 %680 }
 0x1f5   : > { %v710_v43 = vsel %vm353_vm7, %v708_v39, %v685_v40  ;;  %v709_v46 = vsel %vm350_vm6, %v707_v36, %v681_v42  ;;  %v755_v18 = vpop.permute.xlu2 %754  ;;  %v1668_v36 = vld [vmem:[#allocation6 + $0x11] ss:$0 sm:$0xff] }
 0x1f6   : > { %v711_v47 = vsel %vm353_vm7, %v709_v46, %v687_v24 }
 0x1fa   : > { %944 = vrot.lane.b32.xlu1 %v2438_v41, %s2919_s15  ;;  %942 = vrot.lane.b32.xlu0 %v2429_v45, %s2919_s15 }
 0x1fb   : > { %948 = vrot.lane.b32.xlu2 %v2429_v45, %s2907_s20 }
 0x1fc   : > { %v693_v49 = vpop.permute.xlu1 %692  ;;  %v691_v50 = vpop.permute.xlu0 %690 }
 0x1fd   : > { %v713_v52 = vsel %vm356_vm8, %v711_v47, %v693_v49  ;;  %v712_v26 = vsel %vm356_vm8, %v710_v43, %v691_v50  ;;  %v763_v25 = vpop.permute.xlu2 %762 }
 0x1fe   : > { %v714_v55 = vsel %vm359_vm9, %v712_v26, %v697_v32 }
 0x1ff   : > { %v718_v57 = vmul.f32 %v1664_v48, %v714_v55  ;;  %v722_v60 = vmul.f32 %v1665_v58, %v714_v55  ;;  %v733_v51 = vmul.f32 %v1666_v53, %v714_v55 }
 0x201   : > { %v719_v54 = vadd.f32 %v718_v57, %v653_v27  ;;  %v726_v1 = vrot.slane %v722_v60, 1  ;;  %v737_v2 = vrot.slane %v733_v51, 2 }
 0x202   : > { %954 = vrot.lane.b32.xlu1 %v2429_v45, %s2920_s12  ;;  %950 = vrot.lane.b32.xlu0 %v2438_v41, %s2907_s20 }
 0x203   : > { %956 = vrot.lane.b32.xlu2 %v2438_v41, %s2920_s12 }
 0x204   : > { %v743_v59 = vpop.permute.xlu1 %742  ;;  %v699_v61 = vpop.permute.xlu0 %698 }
 0x205   : > { %v715_v62 = vsel %vm359_vm9, %v713_v52, %v699_v61  ;;  %v773_v44 = vpop.permute.xlu2 %772 }
 0x206   : > { %v723_v0 = vmul.f32 %v1665_v58, %v715_v62  ;;  %v734_v56 = vmul.f32 %v1666_v53, %v715_v62 }
 0x208   : > { %v727_v3 = vrot.slane %v723_v0, 1  ;;  %v738_v4 = vrot.slane %v734_v56, 2  ;;  %v2580_v0 = vld [vmem:[%s2084_s29 + $0x50] sm:$0x3]  ;;  %v2583_v56 = vld [vmem:[%s2084_s29 + $0x48] sm:$0xff]  ;;  %s2924_s29 = smov 48  }
 0x20a   : > { %v728_v5 = vsel %vm372_vm10, %v726_v1, %v727_v3  ;;  %v739_v6 = vsel %vm384_vm11, %v737_v2, %v738_v4  ;;  %962 = vrot.lane.b32.xlu1 %v2438_v41, %s2908_s8  ;;  %960 = vrot.lane.b32.xlu0 %v2429_v45, %s2908_s8 }
 0x20b   : > { %v730_v7 = vadd.f32 %v728_v5, %v719_v54  ;;  %1006 = vrot.lane.b32.xlu2 %v2429_v45, %s2909_s10 }
 0x20c   : > { %v751_v8 = vpop.permute.xlu1 %750  ;;  %v749_v9 = vpop.permute.xlu0 %748 }
 0x20d   : > { %v791_v10 = vsel %vm341_vm3, %v745_v38, %v751_v8  ;;  %v790_v11 = vsel %vm341_vm3, %v743_v59, %v749_v9  ;;  %v781_v12 = vpop.permute.xlu2 %780  ;;  %v741_v13 = vadd.f32 %v739_v6, %v730_v7 }
 0x20e   : > { %v792_v14 = vsel %vm344_vm4, %v790_v11, %v755_v18 }
 0x212   : > { %1012 = vrot.lane.b32.xlu1 %v2429_v45, %s2910_s26  ;;  %1008 = vrot.lane.b32.xlu0 %v2438_v41, %s2909_s10 }
 0x213   : > { %1014 = vrot.lane.b32.xlu2 %v2438_v41, %s2910_s26 }
 0x214   : > { %v761_v15 = vpop.permute.xlu1 %760  ;;  %v757_v16 = vpop.permute.xlu0 %756 }
 0x215   : > { %v794_v17 = vsel %vm347_vm5, %v792_v14, %v761_v15  ;;  %v793_v19 = vsel %vm344_vm4, %v791_v10, %v757_v16  ;;  %v837_v20 = vpop.permute.xlu2 %836 }
 0x216   : > { %v795_v21 = vsel %vm347_vm5, %v793_v19, %v763_v25  ;;  %v878_v57 = vsel %vm341_vm3, %v2429_v45, %v837_v20 }
 0x21a   : > { %1020 = vrot.lane.b32.xlu1 %v2438_v41, %s2911_s6  ;;  %1018 = vrot.lane.b32.xlu0 %v2429_v45, %s2911_s6 }
 0x21b   : > { %1024 = vrot.lane.b32.xlu2 %v2429_v45, %s2912_s24 }
 0x21c   : > { %v769_v63 = vpop.permute.xlu1 %768  ;;  %v767_v22 = vpop.permute.xlu0 %766 }
 0x21d   : > { %v797_v23 = vsel %vm350_vm6, %v795_v21, %v769_v63  ;;  %v796_v24 = vsel %vm350_vm6, %v794_v17, %v767_v22  ;;  %v845_v27 = vpop.permute.xlu2 %844  ;;  %v1671_v21 = vld [vmem:[#allocation6 + $0x15] ss:$0 sm:$0xff]  ;;  %v1672_v63 = vld [vmem:[#allocation6 + $0x18] ss:$0 sm:$0xff] }
 0x21e   : > { %v798_v28 = vsel %vm353_vm7, %v796_v24, %v773_v44 }
 0x222   : > { %1030 = vrot.lane.b32.xlu1 %v2429_v45, %s2888_s3  ;;  %1026 = vrot.lane.b32.xlu0 %v2438_v41, %s2912_s24 }
 0x223   : > { %1032 = vrot.lane.b32.xlu2 %v2438_v41, %s2888_s3  ;;  %s2923_s3 = smov 32  }
 0x224   : > { %v779_v29 = vpop.permute.xlu1 %778  ;;  %v775_v30 = vpop.permute.xlu0 %774 }
 0x225   : > { %v800_v31 = vsel %vm356_vm8, %v798_v28, %v779_v29  ;;  %v799_v32 = vsel %vm353_vm7, %v797_v23, %v775_v30  ;;  %v855_v33 = vpop.permute.xlu2 %854 }
 0x226   : > { %v801_v34 = vsel %vm356_vm8, %v799_v32, %v781_v12  ;;  %v1670_v12 = vld [vmem:[#allocation6 + $0x12] ss:$0 sm:$0xff] }
 0x22a   : > { %1038 = vrot.lane.b32.xlu1 %v2438_v41, %s2884_s28  ;;  %1036 = vrot.lane.b32.xlu0 %v2429_v45, %s2884_s28  ;;  %s2921_s28 = smov 110  }
 0x22b   : > { %1042 = vrot.lane.b32.xlu2 %v2429_v45, %s2886_s25 }
 0x22c   : > { %v787_v38 = vpop.permute.xlu1 %786  ;;  %v785_v39 = vpop.permute.xlu0 %784 }
 0x22d   : > { %v803_v40 = vsel %vm359_vm9, %v801_v34, %v787_v38  ;;  %v802_v42 = vsel %vm359_vm9, %v800_v31, %v785_v39  ;;  %v863_v43 = vpop.permute.xlu2 %862 }
 0x22e   : > { %v811_v46 = vmul.f32 %v1667_v35, %v803_v40  ;;  %v822_v18 = vmul.f32 %v1668_v36, %v803_v40  ;;  %v806_v47 = vmul.f32 %v1669_v37, %v802_v42  ;;  %v810_v48 = vmul.f32 %v1667_v35, %v802_v42 }
 0x22f   : > { %v821_v49 = vmul.f32 %v1668_v36, %v802_v42 }
 0x230   : > { %v815_v50 = vrot.slane %v811_v46, 1  ;;  %v826_v52 = vrot.slane %v822_v18, 2  ;;  %v807_v26 = vadd.f32 %v806_v47, %v741_v13  ;;  %v814_v25 = vrot.slane %v810_v48, 1 }
 0x231   : > { %v825_v55 = vrot.slane %v821_v49, 2 }
 0x232   : > { %v816_v58 = vsel %vm372_vm10, %v814_v25, %v815_v50  ;;  %1048 = vrot.lane.b32.xlu1 %v2429_v45, %s2921_s28  ;;  %1044 = vrot.lane.b32.xlu0 %v2438_v41, %s2886_s25  ;;  %s2922_s25 = smov 16  }
 0x233   : > { %v818_v53 = vadd.f32 %v816_v58, %v807_v26  ;;  %v827_v54 = vsel %vm384_vm11, %v825_v55, %v826_v52  ;;  %1050 = vrot.lane.b32.xlu2 %v2438_v41, %s2921_s28 }
 0x234   : > { %v843_v59 = vpop.permute.xlu1 %842  ;;  %v839_v60 = vpop.permute.xlu0 %838 }
 0x235   : > { %v829_v51 = vadd.f32 %v827_v54, %v818_v53  ;;  %v880_v61 = vsel %vm344_vm4, %v878_v57, %v843_v59  ;;  %v879_v62 = vsel %vm341_vm3, %v2438_v41, %v839_v60  ;;  %v873_v44 = vpop.permute.xlu2 %872 }
 0x236   : > { %v881_v45 = vsel %vm344_vm4, %v879_v62, %v845_v27 }
 0x23a   : > { %1102 = vrot.lane.b32.xlu1 %v2580_v0, %s2922_s25  ;;  %1100 = vrot.lane.b32.xlu0 %v2583_v56, %s2922_s25  ;;  %s2925_s25 = smov 64  }
 0x23b   : > { %1106 = vrot.lane.b32.xlu2 %v2583_v56, %s2923_s3 }
 0x23c   : > { %v851_v1 = vpop.permute.xlu1 %850  ;;  %v849_v2 = vpop.permute.xlu0 %848 }
 0x23d   : > { %v883_v41 = vsel %vm347_vm5, %v881_v45, %v851_v1  ;;  %v882_v3 = vsel %vm347_vm5, %v880_v61, %v849_v2  ;;  %v921_v4 = vpop.permute.xlu2 %920  ;;  %v1673_v2 = vld [vmem:[#allocation6 + $0x16] ss:$0 sm:$0xff] }
 0x23e   : > { %v884_v5 = vsel %vm350_vm6, %v882_v3, %v855_v33  ;;  %v1675_v3 = vld [vmem:[#allocation6 + $0x13] ss:$0 sm:$0xff] }
 0x242   : > { %1112 = vrot.lane.b32.xlu1 %v2583_v56, %s2924_s29  ;;  %1108 = vrot.lane.b32.xlu0 %v2580_v0, %s2923_s3  ;;  %s2926_s3 = smov 80  }
 0x243   : > { %1114 = vrot.lane.b32.xlu2 %v2580_v0, %s2924_s29 }
 0x244   : > { %v861_v6 = vpop.permute.xlu1 %860  ;;  %v857_v7 = vpop.permute.xlu0 %856 }
 0x245   : > { %v886_v8 = vsel %vm353_vm7, %v884_v5, %v861_v6  ;;  %v885_v9 = vsel %vm350_vm6, %v883_v41, %v857_v7  ;;  %v931_v10 = vpop.permute.xlu2 %930  ;;  %v1674_v41 = vld [vmem:[#allocation6 + $0x19] ss:$0 sm:$0xff] }
 0x246   : > { %v887_v11 = vsel %vm353_vm7, %v885_v9, %v863_v43 }
 0x24a   : > { %1120 = vrot.lane.b32.xlu1 %v2580_v0, %s2925_s25  ;;  %1118 = vrot.lane.b32.xlu0 %v2583_v56, %s2925_s25 }
 0x24b   : > { %1124 = vrot.lane.b32.xlu2 %v2583_v56, %s2926_s3 }
 0x24c   : > { %v869_v13 = vpop.permute.xlu1 %868  ;;  %v867_v14 = vpop.permute.xlu0 %866 }
 0x24d   : > { %v889_v15 = vsel %vm356_vm8, %v887_v11, %v869_v13  ;;  %v888_v16 = vsel %vm356_vm8, %v886_v8, %v867_v14  ;;  %v939_v17 = vpop.permute.xlu2 %938 }
 0x24e   : > { %v890_v19 = vsel %vm359_vm9, %v888_v16, %v873_v44 }
 0x24f   : > { %v894_v20 = vmul.f32 %v1670_v12, %v890_v19  ;;  %v898_v24 = vmul.f32 %v1671_v21, %v890_v19  ;;  %v909_v27 = vmul.f32 %v1672_v63, %v890_v19 }
 0x251   : > { %v895_v22 = vadd.f32 %v894_v20, %v829_v51  ;;  %v902_v33 = vrot.slane %v898_v24, 1  ;;  %v913_v34 = vrot.slane %v909_v27, 2 }
 0x252   : > { %1130 = vrot.lane.b32.xlu1 %v2583_v56, %s2913_s5  ;;  %1126 = vrot.lane.b32.xlu0 %v2580_v0, %s2926_s3 }
 0x253   : > { %1132 = vrot.lane.b32.xlu2 %v2580_v0, %s2913_s5  ;;  %s2934_s5 = sand.u32 1, %s1838_s13  }
 0x254   : > { %v919_v23 = vpop.permute.xlu1 %918  ;;  %v875_v28 = vpop.permute.xlu0 %874 }
 0x255   : > { %v891_v29 = vsel %vm359_vm9, %v889_v15, %v875_v28  ;;  %v949_v30 = vpop.permute.xlu2 %948 }
 0x256   : > { %v899_v31 = vmul.f32 %v1671_v21, %v891_v29  ;;  %v910_v32 = vmul.f32 %v1672_v63, %v891_v29 }
 0x258   : > { %v903_v35 = vrot.slane %v899_v31, 1  ;;  %v914_v36 = vrot.slane %v910_v32, 2 }
 0x25a   : > { %v904_v37 = vsel %vm372_vm10, %v902_v33, %v903_v35  ;;  %v915_v38 = vsel %vm384_vm11, %v913_v34, %v914_v36  ;;  %1138 = vrot.lane.b32.xlu1 %v2580_v0, %s2914_s7  ;;  %1136 = vrot.lane.b32.xlu0 %v2583_v56, %s2914_s7  ;;  %s1361_s7 = scalar_lea.sflag [#allocation5], %s2934_s5 }
 0x25b   : > { %v906_v39 = vadd.f32 %v904_v37, %v895_v22  ;;  %1182 = vrot.lane.b32.xlu2 %v2583_v56, %s2915_s4 }
 0x25c   : > { %v927_v40 = vpop.permute.xlu1 %926  ;;  %v925_v42 = vpop.permute.xlu0 %924 }
 0x25d   : > { %v967_v43 = vsel %vm341_vm3, %v921_v4, %v927_v40  ;;  %v966_v46 = vsel %vm341_vm3, %v919_v23, %v925_v42  ;;  %v957_v18 = vpop.permute.xlu2 %956  ;;  %v917_v47 = vadd.f32 %v915_v38, %v906_v39 }
 0x25e   : > { %v968_v48 = vsel %vm344_vm4, %v966_v46, %v931_v10 }
 0x262   : > { %1188 = vrot.lane.b32.xlu1 %v2583_v56, %s2916_s30  ;;  %1184 = vrot.lane.b32.xlu0 %v2580_v0, %s2915_s4 }
 0x263   : > { %1190 = vrot.lane.b32.xlu2 %v2580_v0, %s2916_s30 }
 0x264   : > { %v937_v49 = vpop.permute.xlu1 %936  ;;  %v933_v50 = vpop.permute.xlu0 %932 }
 0x265   : > { %v970_v52 = vsel %vm347_vm5, %v968_v48, %v937_v49  ;;  %v969_v26 = vsel %vm344_vm4, %v967_v43, %v933_v50  ;;  %v1007_v25 = vpop.permute.xlu2 %1006  ;;  %v1676_v50 = vld [vmem:[#allocation6 + $0x14] ss:$0 sm:$0xff] }
 0x266   : > { %v971_v55 = vsel %vm347_vm5, %v969_v26, %v939_v17  ;;  %v1678_v26 = vld [vmem:[#allocation6 + $0x1a] ss:$0 sm:$0xff] }
 0x26a   : > { %1196 = vrot.lane.b32.xlu1 %v2580_v0, %s2917_s23  ;;  %1194 = vrot.lane.b32.xlu0 %v2583_v56, %s2917_s23  ;;  %s2929_s23 = smov 94  }
 0x26b   : > { %1200 = vrot.lane.b32.xlu2 %v2583_v56, %s2918_s11 }
 0x26c   : > { %v945_v57 = vpop.permute.xlu1 %944  ;;  %v943_v58 = vpop.permute.xlu0 %942 }
 0x26d   : > { %v973_v53 = vsel %vm350_vm6, %v971_v55, %v945_v57  ;;  %v972_v54 = vsel %vm350_vm6, %v970_v52, %v943_v58  ;;  %v1015_v59 = vpop.permute.xlu2 %1014  ;;  %v1677_v52 = vld [vmem:[#allocation6 + $0x17] ss:$0 sm:$0xff] }
 0x26e   : > { %v974_v60 = vsel %vm353_vm7, %v972_v54, %v949_v30 }
 0x272   : > { %1206 = vrot.lane.b32.xlu1 %v2583_v56, %s2919_s15  ;;  %1202 = vrot.lane.b32.xlu0 %v2580_v0, %s2918_s11  ;;  %s2927_s11 = smov 62  }
 0x273   : > { %1208 = vrot.lane.b32.xlu2 %v2580_v0, %s2919_s15  ;;  %s2928_s15 = smov 78  }
 0x274   : > { %v955_v51 = vpop.permute.xlu1 %954  ;;  %v951_v61 = vpop.permute.xlu0 %950 }
 0x275   : > { %v976_v62 = vsel %vm356_vm8, %v974_v60, %v955_v51  ;;  %v975_v44 = vsel %vm353_vm7, %v973_v53, %v951_v61  ;;  %v1025_v45 = vpop.permute.xlu2 %1024 }
 0x276   : > { %v977_v1 = vsel %vm356_vm8, %v975_v44, %v957_v18 }
 0x27a   : > { %1214 = vrot.lane.b32.xlu1 %v2580_v0, %s2907_s20  ;;  %1212 = vrot.lane.b32.xlu0 %v2583_v56, %s2907_s20 }
 0x27b   : > { %1218 = vrot.lane.b32.xlu2 %v2583_v56, %s2920_s12 }
 0x27c   : > { %v963_v4 = vpop.permute.xlu1 %962  ;;  %v961_v5 = vpop.permute.xlu0 %960 }
 0x27d   : > { %v979_v6 = vsel %vm359_vm9, %v977_v1, %v963_v4  ;;  %v978_v7 = vsel %vm359_vm9, %v976_v62, %v961_v5  ;;  %v1033_v8 = vpop.permute.xlu2 %1032 }
 0x27e   : > { %v987_v9 = vmul.f32 %v1673_v2, %v979_v6  ;;  %v998_v10 = vmul.f32 %v1674_v41, %v979_v6  ;;  %v982_v11 = vmul.f32 %v1675_v3, %v978_v7  ;;  %v986_v12 = vmul.f32 %v1673_v2, %v978_v7 }
 0x27f   : > { %v997_v13 = vmul.f32 %v1674_v41, %v978_v7 }
 0x280   : > { %v991_v14 = vrot.slane %v987_v9, 1  ;;  %v1002_v15 = vrot.slane %v998_v10, 2  ;;  %v983_v16 = vadd.f32 %v982_v11, %v917_v47  ;;  %v990_v17 = vrot.slane %v986_v12, 1 }
 0x281   : > { %v1001_v19 = vrot.slane %v997_v13, 2 }
 0x282   : > { %v992_v20 = vsel %vm372_vm10, %v990_v17, %v991_v14  ;;  %1224 = vrot.lane.b32.xlu1 %v2583_v56, %s2908_s8  ;;  %1220 = vrot.lane.b32.xlu0 %v2580_v0, %s2920_s12 }
 0x283   : > { %v994_v21 = vadd.f32 %v992_v20, %v983_v16  ;;  %1226 = vrot.lane.b32.xlu2 %v2580_v0, %s2908_s8  ;;  %v1003_v63 = vsel %vm384_vm11, %v1001_v19, %v1002_v15  ;;  %s2932_s8 = scalar_lea.vmem [#allocation8], %s2071_s27 }
 0x284   : > { %v1013_v22 = vpop.permute.xlu1 %1012  ;;  %v1009_v23 = vpop.permute.xlu0 %1008 }
 0x285   : > { %v1054_v24 = vsel %vm341_vm3, %v1007_v25, %v1013_v22  ;;  %v1055_v27 = vsel %vm341_vm3, %v1009_v23, %v1015_v59  ;;  %v1043_v28 = vpop.permute.xlu2 %1042  ;;  %v1005_v29 = vadd.f32 %v1003_v63, %v994_v21 }
 0x28a   : > { %1272 = vrot.lane.b32.xlu1 %v2580_v0, %s2909_s10  ;;  %1270 = vrot.lane.b32.xlu0 %v2583_v56, %s2909_s10  ;;  %s1375_s10 = sshll.u32 %s2932_s8, 4  ;;  %s1376_s10 = int_to_ptr.vmem [resolvable:$true] %s1375_s10 }
 0x28b   : > { %1276 = vrot.lane.b32.xlu2 %v2583_v56, %s2910_s26 }
 0x28c   : > { %v1021_v30 = vpop.permute.xlu1 %1020  ;;  %v1019_v31 = vpop.permute.xlu0 %1018 }
 0x28d   : > { %v1057_v32 = vsel %vm344_vm4, %v1055_v27, %v1021_v30  ;;  %v1056_v33 = vsel %vm344_vm4, %v1054_v24, %v1019_v31  ;;  %v1051_v34 = vpop.permute.xlu2 %1050  ;;  %v1679_v30 = vld [vmem:[#allocation6 + $0x1e] ss:$0 sm:$0xff]  ;;  %v1680_v31 = vld [vmem:[#allocation6 + $0x21] ss:$0 sm:$0xff] }
 0x28e   : > { %v1058_v35 = vsel %vm347_vm5, %v1056_v33, %v1025_v45 }
 0x292   : > { %1282 = vrot.lane.b32.xlu1 %v2583_v56, %s2911_s6  ;;  %1278 = vrot.lane.b32.xlu0 %v2580_v0, %s2910_s26  ;;  %s2933_s26 = smov %s2932_s8 }
 0x293   : > { %1284 = vrot.lane.b32.xlu2 %v2580_v0, %s2911_s6 }
 0x294   : > { %v1031_v36 = vpop.permute.xlu1 %1030  ;;  %v1027_v37 = vpop.permute.xlu0 %1026 }
 0x295   : > { %v1060_v38 = vsel %vm350_vm6, %v1058_v35, %v1031_v36  ;;  %v1059_v39 = vsel %vm347_vm5, %v1057_v32, %v1027_v37  ;;  %v1107_v40 = vpop.permute.xlu2 %1106  ;;  %v1681_v32 = vld [vmem:[#allocation6 + $0x1b] ss:$0 sm:$0xff] }
 0x296   : > { %v1061_v42 = vsel %vm350_vm6, %v1059_v39, %v1033_v8 }
 0x29a   : > { %1290 = vrot.lane.b32.xlu1 %v2580_v0, %s2912_s24  ;;  %1288 = vrot.lane.b32.xlu0 %v2583_v56, %s2912_s24  ;;  %s2930_s24 = sld [smem:[#allocation19_spill]] }
 0x29b   : > { %1294 = vrot.lane.b32.xlu2 %v2583_v56, %s2927_s11 }
 0x29c   : > { %v1039_v43 = vpop.permute.xlu1 %1038  ;;  %v1037_v46 = vpop.permute.xlu0 %1036 }
 0x29d   : > { %v1063_v18 = vsel %vm353_vm7, %v1061_v42, %v1039_v43  ;;  %v1062_v47 = vsel %vm353_vm7, %v1060_v38, %v1037_v46  ;;  %v1115_v48 = vpop.permute.xlu2 %1114 }
 0x29e   : > { %v1064_v49 = vsel %vm356_vm8, %v1062_v47, %v1043_v28 }
 0x2a2   : > { %1300 = vrot.lane.b32.xlu1 %v2583_v56, %s2928_s15  ;;  %1296 = vrot.lane.b32.xlu0 %v2580_v0, %s2927_s11 }
 0x2a3   : > { %1302 = vrot.lane.b32.xlu2 %v2580_v0, %s2928_s15  ;;  %s1768_s15 = scalar_lea.hbm %s2930_s24, 32 }
 0x2a4   : > { %v1049_v25 = vpop.permute.xlu1 %1048  ;;  %v1045_v55 = vpop.permute.xlu0 %1044 }
 0x2a5   : > { %v1066_v57 = vsel %vm359_vm9, %v1064_v49, %v1049_v25  ;;  %v1065_v58 = vsel %vm356_vm8, %v1063_v18, %v1045_v55  ;;  %v1125_v53 = vpop.permute.xlu2 %1124 }
 0x2a6   : > { %v1070_v54 = vmul.f32 %v1676_v50, %v1066_v57  ;;  %v1074_v59 = vmul.f32 %v1677_v52, %v1066_v57  ;;  %v1085_v60 = vmul.f32 %v1678_v26, %v1066_v57  ;;  %v1067_v51 = vsel %vm359_vm9, %v1065_v58, %v1051_v34 }
 0x2a7   : > { %v1075_v61 = vmul.f32 %v1677_v52, %v1067_v51  ;;  %v1086_v62 = vmul.f32 %v1678_v26, %v1067_v51 }
 0x2a8   : > { %v1071_v44 = vadd.f32 %v1070_v54, %v1005_v29  ;;  %v1078_v45 = vrot.slane %v1074_v59, 1  ;;  %v1089_v1 = vrot.slane %v1085_v60, 2 }
 0x2a9   : > { %v1079_v2 = vrot.slane %v1075_v61, 1  ;;  %v1090_v41 = vrot.slane %v1086_v62, 2 }
 0x2aa   : > { %1308 = vrot.lane.b32.xlu1 %v2580_v0, %s2929_s23  ;;  %1306 = vrot.lane.b32.xlu0 %v2583_v56, %s2929_s23 }
 0x2ab   : > { %v1080_v3 = vsel %vm372_vm10, %v1078_v45, %v1079_v2  ;;  %1312 = vrot.lane.b32.xlu2 %v2583_v56, %s2921_s28  ;;  %v1091_v4 = vsel %vm384_vm11, %v1089_v1, %v1090_v41 }
 0x2ac   : > { %v1103_v5 = vpop.permute.xlu1 %1102  ;;  %v1101_v6 = vpop.permute.xlu0 %1100  ;;  %v1082_v7 = vadd.f32 %v1080_v3, %v1071_v44 }
 0x2ad   : > { %v1142_v8 = vsel %vm341_vm3, %v2583_v56, %v1101_v6  ;;  %v1133_v11 = vpop.permute.xlu2 %1132  ;;  %v1143_v12 = vsel %vm341_vm3, %v2580_v0, %v1103_v5 }
 0x2ae   : > { %v1144_v9 = vsel %vm344_vm4, %v1142_v8, %v1107_v40  ;;  %v1093_v10 = vadd.f32 %v1091_v4, %v1082_v7  ;;  %v1682_v7 = vld [vmem:[#allocation6 + $0x1c] ss:$0 sm:$0xff]  ;;  %v1683_v8 = vld [vmem:[#allocation6 + $0x1f] ss:$0 sm:$0xff] }
 0x2b2   : > { %1314 = vrot.lane.b32.xlu0 %v2580_v0, %s2921_s28  ;;  %s1506_s28 = sshll.u32 %s1862_s19, 1 }
 0x2b3   : > { %s1371_s30 = sadd.s32 %s1858_s18, %s1506_s28 }
 0x2b4   : > { %v1113_v13 = vpop.permute.xlu1 %1112  ;;  %v1109_v14 = vpop.permute.xlu0 %1108  ;;  %s1507_s19 = sshll.u32 %s1371_s30, 3 }
 0x2b5   : > { %v1146_v15 = vsel %vm347_vm5, %v1144_v9, %v1113_v13  ;;  %v1145_v16 = vsel %vm344_vm4, %v1143_v12, %v1109_v14  ;;  %v1183_v19 = vpop.permute.xlu2 %1182  ;;  %v1684_v9 = vld [vmem:[#allocation6 + $0x22] ss:$0 sm:$0xff]  ;;  %s1373_s6 = scalar_lea.hbm %s2930_s24, %s1507_s19 }
 0x2b6   : > { %v1147_v17 = vsel %vm347_vm5, %v1145_v16, %v1115_v48  ;;  %s1377_s12 = sshll.u32 %s1373_s6, 4  ;;  %s1378_s12 = int_to_ptr.hbm [resolvable:$true] %s1377_s12 }
 0x2b7   : > { %s1762_s29 = sshra.s32 %s1378_s12, 4  ;;  %s1763_s29 = int_to_ptr.hbm [resolvable:$true] %s1762_s29 }
 0x2b8   : > { %s1764_s25 = scalar_lea.hbm %s1763_s29, 8  ;;  %p1769_p2 = scmp.lt.s32.totalorder %s1763_s29, %s2930_s24 }
 0x2b9   : > { %p1765_p1 = scmp.ne.s32.totalorder %s1763_s29, %s1764_s25  ;;  %p1770_p3 = scmp.lt.s32.totalorder %s1768_s15, %s1764_s25 }
 0x2bb   : > { %p1766_p4 = pnand %p1765_p1, %p1994_p6  ;;  %p1771_p5 = por %p1770_p3, %p1769_p2 }
 0x2bc   : > { %v1121_v56 = vpop.permute.xlu1 %1120  ;;  %v1119_v20 = vpop.permute.xlu0 %1118 }
 0x2bd   : > { %v1149_v21 = vsel %vm350_vm6, %v1147_v17, %v1121_v56  ;;  %v1148_v63 = vsel %vm350_vm6, %v1146_v15, %v1119_v20  ;;  %v1191_v23 = vpop.permute.xlu2 %1190  ;;  %p1767_p0 = pneg %p1766_p4 }
 0x2be   : > { %v1150_v22 = vsel %vm353_vm7, %v1148_v63, %v1125_v53 }
 0x2bf   : > { %p1772_p7 = pnand %p1771_p5, %p1767_p0 }
 0x2c4   : > { %v1131_v24 = vpop.permute.xlu1 %1130  ;;  %v1127_v0 = vpop.permute.xlu0 %1126 }
 0x2c5   : > { %v1152_v27 = vsel %vm356_vm8, %v1150_v22, %v1131_v24  ;;  %v1151_v28 = vsel %vm353_vm7, %v1149_v21, %v1127_v0  ;;  %v1201_v37 = vpop.permute.xlu2 %1200 }
 0x2c6   : > { %v1153_v29 = vsel %vm356_vm8, %v1151_v28, %v1133_v11 }
 0x2cc   : > { %v1139_v33 = vpop.permute.xlu1 %1138  ;;  %v1137_v34 = vpop.permute.xlu0 %1136 }
 0x2cd   : > { %v1155_v35 = vsel %vm359_vm9, %v1153_v29, %v1139_v33  ;;  %v1154_v36 = vsel %vm359_vm9, %v1152_v27, %v1137_v34  ;;  %v1209_v58 = vpop.permute.xlu2 %1208 }
 0x2ce   : > { %v1163_v38 = vmul.f32 %v1679_v30, %v1155_v35  ;;  %v1174_v39 = vmul.f32 %v1680_v31, %v1155_v35  ;;  %v1158_v40 = vmul.f32 %v1681_v32, %v1154_v36  ;;  %v1162_v42 = vmul.f32 %v1679_v30, %v1154_v36 }
 0x2cf   : > { %v1173_v43 = vmul.f32 %v1680_v31, %v1154_v36 }
 0x2d0   : > { %v1167_v46 = vrot.slane %v1163_v38, 1  ;;  %v1178_v18 = vrot.slane %v1174_v39, 2  ;;  %v1159_v47 = vadd.f32 %v1158_v40, %v1093_v10  ;;  %v1166_v48 = vrot.slane %v1162_v42, 1 }
 0x2d1   : > { %v1177_v49 = vrot.slane %v1173_v43, 2 }
 0x2d2   : > { %v1168_v50 = vsel %vm372_vm10, %v1166_v48, %v1167_v46 }
 0x2d3   : > { %v1170_v52 = vadd.f32 %v1168_v50, %v1159_v47  ;;  %v1179_v26 = vsel %vm384_vm11, %v1177_v49, %v1178_v18 }
 0x2d4   : > { %v1189_v25 = vpop.permute.xlu1 %1188  ;;  %v1185_v55 = vpop.permute.xlu0 %1184 }
 0x2d5   : > { %v1181_v57 = vadd.f32 %v1179_v26, %v1170_v52  ;;  %v1219_v59 = vpop.permute.xlu2 %1218  ;;  %v1230_v61 = vsel %vm341_vm3, %v1183_v19, %v1189_v25  ;;  %v1231_v2 = vsel %vm341_vm3, %v1185_v55, %v1191_v23 }
 0x2dc   : > { %v1197_v53 = vpop.permute.xlu1 %1196  ;;  %v1195_v54 = vpop.permute.xlu0 %1194 }
 0x2dd   : > { %v1227_v62 = vpop.permute.xlu2 %1226  ;;  %v1232_v44 = vsel %vm344_vm4, %v1230_v61, %v1195_v54  ;;  %v1233_v41 = vsel %vm344_vm4, %v1231_v2, %v1197_v53  ;;  %v1686_v54 = vld [vmem:[#allocation6 + $0x20] ss:$0 sm:$0xff]  ;;  %v1687_v61 = vld [vmem:[#allocation6 + $0x23] ss:$0 sm:$0xff] }
 0x2de   : > { %v1234_v3 = vsel %vm347_vm5, %v1232_v44, %v1201_v37 }
 0x2e4   : > { %v1207_v60 = vpop.permute.xlu1 %1206  ;;  %v1203_v51 = vpop.permute.xlu0 %1202 }
 0x2e5   : > { %v1236_v4 = vsel %vm350_vm6, %v1234_v3, %v1207_v60  ;;  %v1235_v5 = vsel %vm347_vm5, %v1233_v41, %v1203_v51  ;;  %v1277_v21 = vpop.permute.xlu2 %1276  ;;  %v1685_v60 = vld [vmem:[#allocation6 + $0x1d] ss:$0 sm:$0xff] }
 0x2e6   : > { %v1237_v10 = vsel %vm350_vm6, %v1235_v5, %v1209_v58 }
 0x2ec   : > { %v1215_v45 = vpop.permute.xlu1 %1214  ;;  %v1213_v1 = vpop.permute.xlu0 %1212 }
 0x2ed   : > { %v1238_v6 = vsel %vm353_vm7, %v1236_v4, %v1213_v1  ;;  %v1239_v11 = vsel %vm353_vm7, %v1237_v10, %v1215_v45  ;;  %v1285_v35 = vpop.permute.xlu2 %1284 }
 0x2ee   : > { %v1240_v13 = vsel %vm356_vm8, %v1238_v6, %v1219_v59 }
 0x2f4   : > { %v1225_v12 = vpop.permute.xlu1 %1224  ;;  %v1221_v14 = vpop.permute.xlu0 %1220 }
 0x2f5   : > { %v1242_v15 = vsel %vm359_vm9, %v1240_v13, %v1225_v12  ;;  %v1241_v16 = vsel %vm356_vm8, %v1239_v11, %v1221_v14  ;;  %v1295_v38 = vpop.permute.xlu2 %1294 }
 0x2f6   : > { %v1246_v17 = vmul.f32 %v1682_v7, %v1242_v15  ;;  %v1250_v19 = vmul.f32 %v1683_v8, %v1242_v15  ;;  %v1261_v56 = vmul.f32 %v1684_v9, %v1242_v15  ;;  %v1243_v20 = vsel %vm359_vm9, %v1241_v16, %v1227_v62 }
 0x2f7   : > { %v1251_v63 = vmul.f32 %v1683_v8, %v1243_v20  ;;  %v1262_v22 = vmul.f32 %v1684_v9, %v1243_v20 }
 0x2f8   : > { %v1247_v23 = vadd.f32 %v1246_v17, %v1181_v57  ;;  %v1254_v24 = vrot.slane %v1250_v19, 1  ;;  %v1265_v0 = vrot.slane %v1261_v56, 2 }
 0x2f9   : > { %v1255_v27 = vrot.slane %v1251_v63, 1  ;;  %v1266_v28 = vrot.slane %v1262_v22, 2 }
 0x2fb   : > { %v1256_v29 = vsel %vm372_vm10, %v1254_v24, %v1255_v27  ;;  %v1267_v30 = vsel %vm384_vm11, %v1265_v0, %v1266_v28 }
 0x2fc   : > { %v1273_v31 = vpop.permute.xlu1 %1272  ;;  %v1271_v32 = vpop.permute.xlu0 %1270  ;;  %v1258_v33 = vadd.f32 %v1256_v29, %v1247_v23 }
 0x2fd   : > { %v1303_v43 = vpop.permute.xlu2 %1302  ;;  %v1318_v46 = vsel %vm341_vm3, %v1271_v32, %v1277_v21 }
 0x2fe   : > { %v1269_v34 = vadd.f32 %v1267_v30, %v1258_v33 }
 0x304   : > { %v1283_v36 = vpop.permute.xlu1 %1282  ;;  %v1279_v37 = vpop.permute.xlu0 %1278 }
 0x305   : > { %v1320_v47 = vsel %vm344_vm4, %v1318_v46, %v1283_v36  ;;  %v1319_v49 = vsel %vm341_vm3, %v1273_v31, %v1279_v37  ;;  %v1313_v57 = vpop.permute.xlu2 %1312 }
 0x306   : > { %v1321_v25 = vsel %vm344_vm4, %v1319_v49, %v1285_v35 }
 0x30c   : > { %v1289_v39 = vpop.permute.xlu0 %1288  ;;  %v1291_v40 = vpop.permute.xlu1 %1290 }
 0x30d   : > { %v1322_v48 = vsel %vm347_vm5, %v1320_v47, %v1289_v39  ;;  %v1323_v58 = vsel %vm347_vm5, %v1321_v25, %v1291_v40 }
 0x30e   : > { %v1324_v50 = vsel %vm350_vm6, %v1322_v48, %v1295_v38 }
 0x314   : > { %v1297_v42 = vpop.permute.xlu0 %1296  ;;  %v1301_v18 = vpop.permute.xlu1 %1300 }
 0x315   : > { %v1326_v26 = vsel %vm353_vm7, %v1324_v50, %v1301_v18  ;;  %v1325_v53 = vsel %vm350_vm6, %v1323_v58, %v1297_v42 }
 0x316   : > { %v1327_v62 = vsel %vm353_vm7, %v1325_v53, %v1303_v43 }
 0x31c   : > { %v1307_v52 = vpop.permute.xlu0 %1306  ;;  %v1309_v59 = vpop.permute.xlu1 %1308 }
 0x31d   : > { %v1328_v55 = vsel %vm356_vm8, %v1326_v26, %v1307_v52  ;;  %v1329_v44 = vsel %vm356_vm8, %v1327_v62, %v1309_v59 }
 0x31e   : > { %v1330_v51 = vsel %vm359_vm9, %v1328_v55, %v1313_v57 }
 0x31f   : > { %v1338_v45 = vmul.f32 %v1686_v54, %v1330_v51  ;;  %v1334_v2 = vmul.f32 %v1685_v60, %v1330_v51  ;;  %v1349_v3 = vmul.f32 %v1687_v61, %v1330_v51 }
 0x321   : > { %v1342_v6 = vrot.slane %v1338_v45, 1  ;;  %v1335_v9 = vadd.f32 %v1334_v2, %v1269_v34  ;;  %v1353_v10 = vrot.slane %v1349_v3, 2 }
 0x324   : > { %v1315_v1 = vpop.permute.xlu0 %1314 }
 0x325   : > { %v1331_v41 = vsel %vm359_vm9, %v1329_v44, %v1315_v1 }
 0x326   : > { %v1339_v4 = vmul.f32 %v1686_v54, %v1331_v41  ;;  %v1350_v5 = vmul.f32 %v1687_v61, %v1331_v41 }
 0x328   : > { %v1343_v7 = vrot.slane %v1339_v4, 1  ;;  %v1354_v8 = vrot.slane %v1350_v5, 2 }
 0x32a   : > { %v1344_v11 = vsel %vm372_vm10, %v1342_v6, %v1343_v7  ;;  %v1355_v13 = vsel %vm384_vm11, %v1353_v10, %v1354_v8 }
 0x32b   : > { %v1346_v12 = vadd.f32 %v1344_v11, %v1335_v9 }
 0x32d   : > { %v1357_v14 = vadd.f32 %v1355_v13, %v1346_v12 }
 0x32f   : > { %v1358_v15 = vmax.f32 %v1357_v14, 0.0 }
 0x331   : > { %1359 = vst [vmem:[%s2933_s26] sm:$0xff] %v1358_v15 }
 0x332   : > { %1775 = shalt.err (!%p1772_p7)
}
 0x333   : > { %1517 = dma.vmem_to_hbm [thread:$0]  (%p1994_p6), %s1376_s10, 128, %s1378_s12, %s1361_s7  }
 0x334 PF: > { %s2935_s27 = sld [smem:[#allocation12_spill]]  ;;  %p1534_p8 = scmp.ge.s32.totalorder %s1874_s22, 2 }
 0x336   : > { %p1528_p9 = pnand %p1534_p8, %p2000_p10 }
 0x338   : > { %p1529_p12 = pneg %p1528_p9 }
 0x33a   : > { %s1389_s19 = sand.u32 1, %s2935_s27  }
 0x33b   : > { %s1390_s4 = scalar_lea.sflag [#allocation5], %s1389_s19 }
 0x33c   : > { %1829 = dma.done.wait (%p1529_p12), %s1390_s4, 128  }
 0x33d   : > { %1831 = vsyncadd (%p1529_p12), %s1390_s4, 4294967168  ;;  %s20_s22 = sadd.s32 1, %s1874_s22   ;;  %s2937_s18 = sld [smem:[#allocation13_spill]] }
 0x33e   : > { %p17_p13 = scmp.ge.s32.totalorder %s20_s22, 6   ;;  %s2938_s20 = sld [smem:[#allocation16_spill]] }
 0x33f   : > { %s2939_s6 = sld [smem:[#allocation17_spill]]  ;;  %s2940_s12 = smov %s1838_s13 }
 0x340   : > { %s2941_s13 = smov %s1842_s14  ;;  %s2942_s14 = smov %s2045_s1 }
 0x341   : > { %s2943_s15 = smov %s1850_s16  ;;  %s2944_s16 = smov %s1854_s17 }
 0x342   : > { %s2945_s17 = smov %s2042_s9  ;;  %s2946_s19 = smov %s1870_s21 }
 0x343   :  { %19 = sbr.rel (!%p17_p13) target bundleno = 13 (0xd), region = 89 }
 0x345   : > { %s2947_s21 = smov %s2939_s6 }
 0x348   :  { %1396 = vsyncpa [#allocation4], 1 }
 0x349   :  { %1398 = vsyncpa [#allocation4 + $0x1], 1 }
 0x34a   :  { %1399 = vsyncpa [#allocation7], 1 }
 0x34b   :  { %1400 = vsyncpa [#allocation5], 1 }
 0x34c   :  { %1402 = vsyncpa [#allocation5 + $0x1], 1 }

</bundles_post_ra>
